<compile_context>
chip_gen: v5e
topology: v5e:2x2
jax: 0.10.0
libtpu: 0.0.40
codegen_flags: <defaults>
</compile_context>

<pallas_src>
import math
from functools import partial

import jax
import jax.numpy as jnp
from jax.experimental import pallas as pl
from jax.experimental.pallas import tpu as pltpu

# -------------------- problem sizes ----------------------------------------
B = 256          # total batch rows
F = 32           # sample feature dim
C = 32           # global conditioning dim
TE = 32          # sinusoidal time-embedding dim
K1 = F + TE + C + F   # = 128: concat width (noisy | t_emb | cond | self_cond)
H = 128          # hidden width of the epsilon model
T_TRAIN = 1000   # DDPM.DEFAULT_TIMESTEPS


def _pick_rows_per_step(total_rows: int) -> int:
    """Rows per grid step.

    Single-TensorCore chips (v5e / v6e): one full-batch tile -> grid=(1,), one
    input/output DMA round and a full-height MXU pass.  Multi-core chips
    (v7x, v4/v5p megacore): 128-row tiles so the "parallel" grid axis shards
    batch tiles across TensorCores.
    """
    try:
        kind = jax.devices()[0].device_kind.lower()
    except Exception:
        kind = ""
    single_core = any(s in kind for s in
                      ("v5e", "v5 lite", "v5lite", "v6e", "v6 lite", "v6lite"))
    bm = total_rows if single_core else 128
    bm = min(bm, 256)
    while bm > 8 and total_rows % bm:
        bm //= 2
    return max(min(bm, total_rows), 8)


# -------------------- noise schedule (squaredcos_cap_v2, host glue) --------
def make_alphas_cumprod(num_timesteps: int, max_beta: float = 0.999) -> jnp.ndarray:
    t = jnp.arange(num_timesteps, dtype=jnp.float32)

    def alpha_bar(x):
        return jnp.cos((x + 0.008) / 1.008 * jnp.pi / 2.0) ** 2

    betas = 1.0 - alpha_bar((t + 1.0) / num_timesteps) / alpha_bar(t / num_timesteps)
    betas = jnp.clip(betas, 0.0, max_beta)
    alphas = 1.0 - betas
    return jnp.cumprod(alphas)


def sinusoidal_time_embedding(timesteps: jnp.ndarray, dim: int) -> jnp.ndarray:
    half = dim // 2
    freqs = jnp.exp(-math.log(10000.0) * jnp.arange(half, dtype=jnp.float32) / half)
    args = timesteps.astype(jnp.float32)[:, None] * freqs[None, :]
    return jnp.concatenate([jnp.sin(args), jnp.cos(args)], axis=-1)


# -------------------- Pallas kernel -----------------------------------------
def _ddpm_kernel(acp_ref, slab_ref,
                 w1_ref, b1_ref, w2_ref, b2_ref, w3_ref, b3_ref,
                 out_ref, xcat_ref):
    # add_noise coefficients computed in-kernel from alphas_cumprod[t] (BM, 1).
    acp = acp_ref[...]                                   # (BM, 1) f32
    ca = jnp.sqrt(acp)
    cb = jnp.sqrt(1.0 - acp)

    # Lane-dense packed input slab: [sample | noise | t_emb | global_cond].
    slab = slab_ref[...]                                 # (BM, 128) f32

    # Assemble the concatenated layer-1 input in a bf16 VMEM scratch:
    #   lanes [0:32)    noisy sample        = sqrt(acp)*sample + sqrt(1-acp)*noise
    #   lanes [32:96)   t_emb | global_cond (single 64-lane store)
    #   lanes [96:128)  self-conditioning   (always zeros on this eval path;
    #                   rewritten EVERY grid step on purpose -- see header note)
    noisy = ca * slab[:, 0:F] + cb * slab[:, F:2 * F]
    xcat_ref[:, 0:F] = noisy.astype(jnp.bfloat16)
    xcat_ref[:, F:F + TE + C] = slab[:, 2 * F:2 * F + TE + C].astype(jnp.bfloat16)
    xcat_ref[:, F + TE + C:K1] = jnp.zeros((xcat_ref.shape[0], F), jnp.bfloat16)

    # Epsilon-model MLP: bf16 MXU inputs, f32 accumulation, f32 element-wise SiLU.
    x = xcat_ref[...]                                    # already bf16
    h = jnp.dot(x, w1_ref[...], preferred_element_type=jnp.float32) + b1_ref[...]
    h = h * jax.nn.sigmoid(h)                            # SiLU
    h2 = jnp.dot(h.astype(jnp.bfloat16), w2_ref[...],
                 preferred_element_type=jnp.float32) + b2_ref[...]
    h2 = h2 * jax.nn.sigmoid(h2)                         # SiLU
    out = jnp.dot(h2.astype(jnp.bfloat16), w3_ref[...],
                  preferred_element_type=jnp.float32) + b3_ref[...]
    out_ref[...] = out.astype(out_ref.dtype)


@partial(jax.jit, static_argnames=("bm",))
def ddpm_forward(sample, noise, timesteps, global_cond, alphas_cumprod, params,
                 *, bm=128):
    """DDPM.forward (eval path): returns model_output (predicted epsilon)."""
    w1, b1, w2, b2, w3, b3 = params
    batch = sample.shape[0]
    assert batch % bm == 0

    # Tiny host glue (one XLA input-prep fusion): schedule gather + sinusoidal
    # time embedding + lane-dense packing of the four 32-lane row inputs.
    # sqrt / add_noise / the MLP all run in-kernel.
    # TODO(synk): the sin/cos embedding could also move in-kernel (idle EUP slot)
    # once in-kernel sin/cos lowering is validated on all target generations.
    acp_t = alphas_cumprod[timesteps].astype(jnp.float32)[:, None]     # (B, 1)
    t_emb = sinusoidal_time_embedding(timesteps, TE)                    # (B, TE)
    slab = jnp.concatenate(
        [sample.astype(jnp.float32), noise.astype(jnp.float32),
         t_emb, global_cond.astype(jnp.float32)], axis=-1)              # (B, 128)

    nb = batch // bm

    def row_spec(width):            # per-batch-tile blocks
        return pl.BlockSpec((bm, width), lambda i: (i, 0))

    def const_spec(shape):          # VMEM-resident weights (constant block index)
        return pl.BlockSpec(shape, lambda i: (0, 0))

    # TODO(synk): const weight specs could use pipeline_mode=pl.Buffered(1) to
    # drop their second buffer (~36 KiB); skipped as a negligible, riskier win.
    return pl.pallas_call(
        _ddpm_kernel,
        out_shape=jax.ShapeDtypeStruct((batch, F), jnp.float32),
        grid=(nb,),
        in_specs=[
            row_spec(1),            # alphas_cumprod[t]
            row_spec(K1),           # packed slab [sample | noise | t_emb | cond]
            const_spec((K1, H)),    # W1 (pre-concatenated, bf16)
            const_spec((1, H)),     # b1
            const_spec((H, H)),     # W2 (bf16)
            const_spec((1, H)),     # b2
            const_spec((H, F)),     # W3 (bf16)
            const_spec((1, F)),     # b3
        ],
        out_specs=row_spec(F),
        scratch_shapes=[pltpu.VMEM((bm, K1), jnp.bfloat16)],
        compiler_params=pltpu.CompilerParams(
            dimension_semantics=("parallel",),      # megacore-shard batch tiles
            vmem_limit_bytes=4 * 1024 * 1024,       # footprint < 1 MiB; headroom
        ),
    )(acp_t, slab, w1, b1, w2, b2, w3, b3)


# -------------------- pure-JAX reference (mirrors the kernel's bf16 math) ---
def ddpm_forward_ref(sample, noise, timesteps, global_cond, alphas_cumprod, params):
    w1, b1, w2, b2, w3, b3 = params
    acp_t = alphas_cumprod[timesteps].astype(jnp.float32)
    noisy = jnp.sqrt(acp_t)[:, None] * sample + jnp.sqrt(1.0 - acp_t)[:, None] * noise
    t_emb = sinusoidal_time_embedding(timesteps, TE)
    self_cond = jnp.zeros_like(sample)
    x = jnp.concatenate([noisy, t_emb, global_cond, self_cond], axis=-1)
    h = jnp.dot(x.astype(jnp.bfloat16), w1, preferred_element_type=jnp.float32) + b1
    h = h * jax.nn.sigmoid(h)
    h2 = jnp.dot(h.astype(jnp.bfloat16), w2, preferred_element_type=jnp.float32) + b2
    h2 = h2 * jax.nn.sigmoid(h2)
    return jnp.dot(h2.astype(jnp.bfloat16), w3, preferred_element_type=jnp.float32) + b3


# -------------------- deterministic parameter init --------------------------
def init_params(key):
    def dense(k, fan_in, shape):
        return jax.random.normal(k, shape, jnp.float32) / jnp.sqrt(fan_in)

    ks = jax.random.split(key, 6)
    w1x = dense(ks[0], K1, (F, H))
    w1t = dense(ks[1], K1, (TE, H))
    w1c = dense(ks[2], K1, (C, H))
    w1s = dense(ks[3], K1, (F, H))    # self-cond block (multiplies zeros at eval)
    # Pre-concatenate the layer-1 weight blocks host-side -> one K=128 matmul.
    w1 = jnp.concatenate([w1x, w1t, w1c, w1s], axis=0).astype(jnp.bfloat16)
    b1 = jnp.zeros((1, H), jnp.float32)
    w2 = dense(ks[4], H, (H, H)).astype(jnp.bfloat16)
    b2 = jnp.zeros((1, H), jnp.float32)
    w3 = dense(ks[5], H, (H, F)).astype(jnp.bfloat16)
    b3 = jnp.zeros((1, F), jnp.float32)
    return (w1, b1, w2, b2, w3, b3)


if __name__ == "__main__":
    key = jax.random.PRNGKey(0)
    k_param, k_sample, k_noise, k_t, k_cond = jax.random.split(key, 5)

    params = init_params(k_param)
    alphas_cumprod = make_alphas_cumprod(T_TRAIN)

    sample = jax.random.normal(k_sample, (B, F), jnp.float32)
    global_cond = jax.random.normal(k_cond, (B, C), jnp.float32)
    # DDPM.forward: timesteps == None  ->  randint(1, T) per batch element
    timesteps = jax.random.randint(k_t, (B,), 1, T_TRAIN, dtype=jnp.int32)
    # noise = randn(sample.shape)
    noise = jax.random.normal(k_noise, (B, F), jnp.float32)
    # TODO(synk): the stochastic self-conditioning pre-pass (torch.rand gate) and the
    # training-loss / learn_snr paths are disabled by the module defaults and are not
    # exercised here (self-conditioning input is identically zero).

    bm = _pick_rows_per_step(B)

    out = jax.block_until_ready(
        ddpm_forward(sample, noise, timesteps, global_cond, alphas_cumprod,
                     params, bm=bm))

    ref = ddpm_forward_ref(sample, noise, timesteps, global_cond,
                           alphas_cumprod, params)
    assert out.shape == (B, F) and out.dtype == jnp.float32
    assert jnp.allclose(out, ref, rtol=1e-3, atol=1e-3), "mismatch vs JAX reference"

    print("KERNEL_OK")
</pallas_src>

<mosaic_0001>
module attributes {stable_mosaic.version = 11 : i64} {
  func.func @_ddpm_kernel(%arg0: i32, %arg1: memref<128x1xf32, #tpu.memory_space<vmem>>, %arg2: memref<128x128xf32, #tpu.memory_space<vmem>>, %arg3: memref<128x128xbf16, #tpu.memory_space<vmem>>, %arg4: memref<1x128xf32, #tpu.memory_space<vmem>>, %arg5: memref<128x128xbf16, #tpu.memory_space<vmem>>, %arg6: memref<1x128xf32, #tpu.memory_space<vmem>>, %arg7: memref<128x32xbf16, #tpu.memory_space<vmem>>, %arg8: memref<1x32xf32, #tpu.memory_space<vmem>>, %arg9: memref<128x32xf32, #tpu.memory_space<vmem>>, %arg10: memref<128x128xbf16, #tpu.memory_space<vmem>>) attributes {dimension_semantics = [#tpu.dimension_semantics<parallel>], iteration_bounds = array<i64: 2>, scalar_prefetch = 0 : i64, scratch_operands = 1 : i64, tpu.core_type = #tpu.core_type<tc>, window_params = [{transform_indices = @transform_0, window_bounds = array<i64: 128, 1>}, {transform_indices = @transform_1, window_bounds = array<i64: 128, 128>}, {pipeline_mode = #tpu.pipeline_mode<synchronous>, transform_indices = @transform_2, window_bounds = array<i64: 128, 128>}, {pipeline_mode = #tpu.pipeline_mode<synchronous>, transform_indices = @transform_3, window_bounds = array<i64: 1, 128>}, {pipeline_mode = #tpu.pipeline_mode<synchronous>, transform_indices = @transform_4, window_bounds = array<i64: 128, 128>}, {pipeline_mode = #tpu.pipeline_mode<synchronous>, transform_indices = @transform_5, window_bounds = array<i64: 1, 128>}, {pipeline_mode = #tpu.pipeline_mode<synchronous>, transform_indices = @transform_6, window_bounds = array<i64: 128, 32>}, {pipeline_mode = #tpu.pipeline_mode<synchronous>, transform_indices = @transform_7, window_bounds = array<i64: 1, 32>}, {transform_indices = @transform_8, window_bounds = array<i64: 128, 32>}]} {
    %c0 = arith.constant 0 : index
    %c0_0 = arith.constant 0 : index
    %0 = vector.load %arg1[%c0, %c0_0] : memref<128x1xf32, #tpu.memory_space<vmem>>, vector<128x1xf32>
    %1 = math.sqrt %0 : vector<128x1xf32>
    %cst = arith.constant 1.000000e+00 : f32
    %2 = vector.broadcast %cst : f32 to vector<128x1xf32>
    %3 = arith.subf %2, %0 : vector<128x1xf32>
    %4 = math.sqrt %3 : vector<128x1xf32>
    %c0_1 = arith.constant 0 : index
    %c0_2 = arith.constant 0 : index
    %5 = vector.load %arg2[%c0_1, %c0_2] : memref<128x128xf32, #tpu.memory_space<vmem>>, vector<128x128xf32>
    %6 = vector.extract_strided_slice %5 {offsets = [0, 0], sizes = [128, 32], strides = [1, 1]} : vector<128x128xf32> to vector<128x32xf32>
    %7 = vector.broadcast %1 : vector<128x1xf32> to vector<128x32xf32>
    %8 = arith.mulf %7, %6 : vector<128x32xf32>
    %9 = vector.extract_strided_slice %5 {offsets = [0, 32], sizes = [128, 32], strides = [1, 1]} : vector<128x128xf32> to vector<128x32xf32>
    %10 = vector.broadcast %4 : vector<128x1xf32> to vector<128x32xf32>
    %11 = arith.mulf %10, %9 : vector<128x32xf32>
    %12 = arith.addf %8, %11 : vector<128x32xf32>
    %13 = arith.truncf %12 : vector<128x32xf32> to vector<128x32xbf16>
    %c0_3 = arith.constant 0 : index
    %c0_4 = arith.constant 0 : index
    %14 = vector.load %arg10[%c0_3, %c0_4] : memref<128x128xbf16, #tpu.memory_space<vmem>>, vector<128x32xbf16>
    tpu.vector_store %arg10[%c0_3, %c0_4], %13 {strides = array<i32>} : memref<128x128xbf16, #tpu.memory_space<vmem>>, vector<128x32xbf16>,
    %15 = vector.extract_strided_slice %5 {offsets = [0, 64], sizes = [128, 64], strides = [1, 1]} : vector<128x128xf32> to vector<128x64xf32>
    %16 = arith.truncf %15 : vector<128x64xf32> to vector<128x64xbf16>
    %c0_5 = arith.constant 0 : index
    %c32 = arith.constant 32 : index
    %17 = vector.load %arg10[%c0_5, %c32] : memref<128x128xbf16, #tpu.memory_space<vmem>>, vector<128x64xbf16>
    tpu.vector_store %arg10[%c0_5, %c32], %16 {strides = array<i32>} : memref<128x128xbf16, #tpu.memory_space<vmem>>, vector<128x64xbf16>,
    %cst_6 = arith.constant 0.000000e+00 : bf16
    %18 = vector.broadcast %cst_6 : bf16 to vector<128x32xbf16>
    %c0_7 = arith.constant 0 : index
    %c96 = arith.constant 96 : index
    %19 = vector.load %arg10[%c0_7, %c96] : memref<128x128xbf16, #tpu.memory_space<vmem>>, vector<128x32xbf16>
    tpu.vector_store %arg10[%c0_7, %c96], %18 {strides = array<i32>} : memref<128x128xbf16, #tpu.memory_space<vmem>>, vector<128x32xbf16>,
    %c0_8 = arith.constant 0 : index
    %c0_9 = arith.constant 0 : index
    %20 = vector.load %arg10[%c0_8, %c0_9] : memref<128x128xbf16, #tpu.memory_space<vmem>>, vector<128x128xbf16>
    %c0_10 = arith.constant 0 : index
    %c0_11 = arith.constant 0 : index
    %21 = vector.load %arg3[%c0_10, %c0_11] : memref<128x128xbf16, #tpu.memory_space<vmem>>, vector<128x128xbf16>
    %cst_12 = arith.constant dense<0.000000e+00> : vector<128x128xf32>
    %22 = tpu.matmul %20, %21, %cst_12 {dimension_numbers = #tpu.dot_dimension_numbers<[1], [0], [0], [1], [0, 0, 1, 1], [], []>} : vector<128x128xbf16>, vector<128x128xbf16>, vector<128x128xf32> -> vector<128x128xf32>
    %c0_13 = arith.constant 0 : index
    %c0_14 = arith.constant 0 : index
    %23 = vector.load %arg4[%c0_13, %c0_14] : memref<1x128xf32, #tpu.memory_space<vmem>>, vector<1x128xf32>
    %24 = vector.broadcast %23 : vector<1x128xf32> to vector<128x128xf32>
    %25 = arith.addf %22, %24 : vector<128x128xf32>
    %26 = arith.negf %25 : vector<128x128xf32>
    %27 = math.exp %26 : vector<128x128xf32>
    %cst_15 = arith.constant 1.000000e+00 : f32
    %28 = vector.broadcast %cst_15 : f32 to vector<128x128xf32>
    %29 = arith.addf %28, %27 : vector<128x128xf32>
    %30 = arith.divf %28, %29 : vector<128x128xf32>
    %31 = arith.mulf %25, %30 : vector<128x128xf32>
    %32 = arith.truncf %31 : vector<128x128xf32> to vector<128x128xbf16>
    %c0_16 = arith.constant 0 : index
    %c0_17 = arith.constant 0 : index
    %33 = vector.load %arg5[%c0_16, %c0_17] : memref<128x128xbf16, #tpu.memory_space<vmem>>, vector<128x128xbf16>
    %cst_18 = arith.constant dense<0.000000e+00> : vector<128x128xf32>
    %34 = tpu.matmul %32, %33, %cst_18 {dimension_numbers = #tpu.dot_dimension_numbers<[1], [0], [0], [1], [0, 0, 1, 1], [], []>} : vector<128x128xbf16>, vector<128x128xbf16>, vector<128x128xf32> -> vector<128x128xf32>
    %c0_19 = arith.constant 0 : index
    %c0_20 = arith.constant 0 : index
    %35 = vector.load %arg6[%c0_19, %c0_20] : memref<1x128xf32, #tpu.memory_space<vmem>>, vector<1x128xf32>
    %36 = vector.broadcast %35 : vector<1x128xf32> to vector<128x128xf32>
    %37 = arith.addf %34, %36 : vector<128x128xf32>
    %38 = arith.negf %37 : vector<128x128xf32>
    %39 = math.exp %38 : vector<128x128xf32>
    %cst_21 = arith.constant 1.000000e+00 : f32
    %40 = vector.broadcast %cst_21 : f32 to vector<128x128xf32>
    %41 = arith.addf %40, %39 : vector<128x128xf32>
    %42 = arith.divf %40, %41 : vector<128x128xf32>
    %43 = arith.mulf %37, %42 : vector<128x128xf32>
    %44 = arith.truncf %43 : vector<128x128xf32> to vector<128x128xbf16>
    %c0_22 = arith.constant 0 : index
    %c0_23 = arith.constant 0 : index
    %45 = vector.load %arg7[%c0_22, %c0_23] : memref<128x32xbf16, #tpu.memory_space<vmem>>, vector<128x32xbf16>
    %cst_24 = arith.constant dense<0.000000e+00> : vector<128x32xf32>
    %46 = tpu.matmul %44, %45, %cst_24 {dimension_numbers = #tpu.dot_dimension_numbers<[1], [0], [0], [1], [0, 0, 1, 1], [], []>} : vector<128x128xbf16>, vector<128x32xbf16>, vector<128x32xf32> -> vector<128x32xf32>
    %c0_25 = arith.constant 0 : index
    %c0_26 = arith.constant 0 : index
    %47 = vector.load %arg8[%c0_25, %c0_26] : memref<1x32xf32, #tpu.memory_space<vmem>>, vector<1x32xf32>
    %48 = vector.broadcast %47 : vector<1x32xf32> to vector<128x32xf32>
    %49 = arith.addf %46, %48 : vector<128x32xf32>
    %c0_27 = arith.constant 0 : index
    %c0_28 = arith.constant 0 : index
    %50 = vector.load %arg9[%c0_27, %c0_28] : memref<128x32xf32, #tpu.memory_space<vmem>>, vector<128x32xf32>
    tpu.vector_store %arg9[%c0_27, %c0_28], %49 {strides = array<i32>} : memref<128x32xf32, #tpu.memory_space<vmem>>, vector<128x32xf32>,
    return
  }
  func.func @transform_0(%arg0: i32) -> (i32, i32) {
    %c0_i32 = arith.constant 0 : i32
    %c0_i32_0 = arith.constant 0 : i32
    return %arg0, %c0_i32 : i32, i32
  }
  func.func @transform_1(%arg0: i32) -> (i32, i32) {
    %c0_i32 = arith.constant 0 : i32
    %c0_i32_0 = arith.constant 0 : i32
    return %arg0, %c0_i32 : i32, i32
  }
  func.func @transform_2(%arg0: i32) -> (i32, i32) {
    %c0_i32 = arith.constant 0 : i32
    %c0_i32_0 = arith.constant 0 : i32
    %c0_i32_1 = arith.constant 0 : i32
    return %c0_i32, %c0_i32_0 : i32, i32
  }
  func.func @transform_3(%arg0: i32) -> (i32, i32) {
    %c0_i32 = arith.constant 0 : i32
    %c0_i32_0 = arith.constant 0 : i32
    %c0_i32_1 = arith.constant 0 : i32
    return %c0_i32, %c0_i32_0 : i32, i32
  }
  func.func @transform_4(%arg0: i32) -> (i32, i32) {
    %c0_i32 = arith.constant 0 : i32
    %c0_i32_0 = arith.constant 0 : i32
    %c0_i32_1 = arith.constant 0 : i32
    return %c0_i32, %c0_i32_0 : i32, i32
  }
  func.func @transform_5(%arg0: i32) -> (i32, i32) {
    %c0_i32 = arith.constant 0 : i32
    %c0_i32_0 = arith.constant 0 : i32
    %c0_i32_1 = arith.constant 0 : i32
    return %c0_i32, %c0_i32_0 : i32, i32
  }
  func.func @transform_6(%arg0: i32) -> (i32, i32) {
    %c0_i32 = arith.constant 0 : i32
    %c0_i32_0 = arith.constant 0 : i32
    %c0_i32_1 = arith.constant 0 : i32
    return %c0_i32, %c0_i32_0 : i32, i32
  }
  func.func @transform_7(%arg0: i32) -> (i32, i32) {
    %c0_i32 = arith.constant 0 : i32
    %c0_i32_0 = arith.constant 0 : i32
    %c0_i32_1 = arith.constant 0 : i32
    return %c0_i32, %c0_i32_0 : i32, i32
  }
  func.func @transform_8(%arg0: i32) -> (i32, i32) {
    %c0_i32 = arith.constant 0 : i32
    %c0_i32_0 = arith.constant 0 : i32
    return %arg0, %c0_i32 : i32, i32
  }
}

</mosaic_0001>

<bundles_post_ra>
// kernel: ddpm_forward.1
= control target key start
LH: loop header
LB: loop body
LE: loop exit
PB: predicated region body
PF: predicated region fallthrough
CT: control target
= control target key end

     0   :  { %s2833_s27 = smov 0   ;;  %s4137_s0 = inlined_call_operand.vmem [shape: f32[256,1], index: 0, kind: input, shape index: {}]   ;;  %s4138_s1 = inlined_call_operand.vmem [shape: f32[256,128], index: 1, kind: input, shape index: {}]   ;;  %s4139_s2 = inlined_call_operand.vmem [shape: bf16[128,128], index: 2, kind: input, shape index: {}]   ;;  %s4140_s3 = inlined_call_operand.vmem [shape: f32[1,128], index: 3, kind: input, shape index: {}]   ;;  %s4141_s4 = inlined_call_operand.vmem [shape: bf16[128,128], index: 4, kind: input, shape index: {}]   ;;  %s4142_s5 = inlined_call_operand.vmem [shape: f32[1,128], index: 5, kind: input, shape index: {}]   ;;  %s4143_s6 = inlined_call_operand.vmem [shape: bf16[128,32], index: 6, kind: input, shape index: {}]   ;;  %s4144_s7 = inlined_call_operand.vmem [shape: f32[1,32], index: 7, kind: input, shape index: {}]   ;;  %s4145_s8 = inlined_call_operand.vmem [shape: f32[256,32], index: 8, kind: output, shape index: {}]  }
   0x1 LB: > { %s2339_s28 = sadd.s32 4294967295, %s2784_s27   ;;  %p2343_p0 = scmp.ge.s32.totalorder %s2784_s27, 1  ;;  %s2784_s27 = sphi %s2833_s27, %s18_s27  }
   0x2   : > { %p274_p1 = scmp.lt.s32.totalorder %s2784_s27, 3 }
   0x4   : > { %p275_p2 = pnand %p2343_p0, %p274_p1 }
   0x5   : > { %s2344_s29 = sshll.u32 (!%p275_p2), %s2339_s28, 4  ;;  %s2787_s15 = smov (!%p275_p2), 96  }
   0x6   : > { %278 = sbr.rel (%p275_p2) target bundleno = 870 (0x366), region = 52  ;;  %p314_p3 = scmp.lt.s32.totalorder (!%p275_p2), %s2344_s29, 31 }
   0xb   : > { %v2786_v0 = vmov 0   ;;  %s4187_s29 = smov (!%p314_p3, %s2344_s29), 31 }
   0xc   : > { %2579 = vset.pattern.permute.xlu1 %v2786_v0  ;;  %2578 = vset.pattern.permute.xlu0 %v2786_v0  ;;  %s2844_s30 = sshll.u32 %s4187_s29, 3 }
   0xd   : > { %2580 = vset.pattern.permute.xlu2 %v2786_v0  ;;  %s2850_s11 = scalar_lea.vmem %s4138_s1, %s2844_s30  ;;  %s2856_s14 = scalar_lea.vmem %s4137_s0, %s2844_s30 }
   0xe   : > { %v2859_v1 = vld [vmem:[%s2850_s11] sm:$0xff]  ;;  %v2862_v2 = vld [vmem:[%s2850_s11 + $0x8] sm:$0xff]  ;;  %v2879_v8 = vld [vmem:[%s2856_s14 + $0x10] sm:$0xff] }
   0xf   : > { %v2865_v3 = vld [vmem:[%s2856_s14 + $0x8] sm:$0xff]  ;;  %v1069_v4 = vpack.c.bf16 %v2859_v1, %v2859_v1  ;;  %v1070_v5 = vpack.c.bf16 %v2862_v2, %v2862_v2  ;;  %v2873_v6 = vld [vmem:[%s2856_s14] sm:$0xff]  ;;  %v2886_v10 = vld [vmem:[%s2856_s14 + $0x18] sm:$0xff]  ;;  %v2894_v12 = vsub.f32 1.0, %v2879_v8 }
  0x10   : > { %2584 = vrsqrt.f32 %v2865_v3  ;;  %v2876_v7 = vld [vmem:[%s2856_s14 + $0x20] sm:$0xff]  ;;  %v2883_v9 = vld [vmem:[%s2856_s14 + $0x28] sm:$0xff]  ;;  %v2897_v13 = vsub.f32 1.0, %v2873_v6  ;;  %v2904_v15 = vsub.f32 1.0, %v2886_v10  ;;  %v2908_v16 = vsub.f32 1.0, %v2865_v3 }
  0x11   : > { %2586 = vrsqrt.f32 %v2873_v6  ;;  %1101 = vrot.lane.b32.xlu1 %v1069_v4, %s2787_s15  ;;  %1103 = vrot.lane.b32.xlu2 %v1070_v5, %s2787_s15  ;;  %v2891_v11 = vsub.f32 1.0, %v2876_v7  ;;  %v2900_v14 = vsub.f32 1.0, %v2883_v9  ;;  %vm367_vm0 = vcmp.eq.f32.partialorder %v2865_v3, inf  ;;  %v2917_v21 = vld [vmem:[%s2856_s14 + $0x60] sm:$0xff] }
  0x12   : > { %vm369_vm1 = vcmp.eq.f32.partialorder %v2865_v3, 0.0  ;;  %v370_v23 = vand.u32 2147483648, %v2865_v3  ;;  %vm355_vm2 = vcmp.eq.f32.partialorder %v2873_v6, inf  ;;  %vm357_vm3 = vcmp.eq.f32.partialorder %v2873_v6, 0.0 }
  0x13   : > { %2588 = vrsqrt.f32 %v2891_v11  ;;  %v358_v26 = vand.u32 2147483648, %v2873_v6  ;;  %v614_v30 = vand.u32 2147483648, %v2891_v11  ;;  %v2928_v31 = vsub.f32 1.0, %v2917_v21 }
  0x14   : > { %2590 = vrsqrt.f32 %v2894_v12  ;;  %vm611_vm4 = vcmp.eq.f32.partialorder %v2891_v11, inf  ;;  %v590_v35 = vand.u32 2147483648, %v2894_v12  ;;  %v566_v36 = vand.u32 2147483648, %v2897_v13 }
  0x15   : > { %2592 = vrsqrt.f32 %v2897_v13  ;;  %vm613_vm5 = vcmp.eq.f32.partialorder %v2891_v11, 0.0  ;;  %vm587_vm6 = vcmp.eq.f32.partialorder %v2894_v12, inf  ;;  %vm563_vm7 = vcmp.eq.f32.partialorder %v2897_v13, inf }
  0x16   : > { %v2585_v17 = vpop.eup %2584  ;;  %2594 = vrsqrt.f32 %v2900_v14  ;;  %vm589_vm8 = vcmp.eq.f32.partialorder %v2894_v12, 0.0  ;;  %vm565_vm9 = vcmp.eq.f32.partialorder %v2897_v13, 0.0  ;;  %vm623_vm10 = vcmp.eq.f32.partialorder %v2900_v14, inf }
  0x17   : > { %v2587_v18 = vpop.eup %2586  ;;  %v361_v19 = vmul.f32 %v2585_v17, %v2865_v3  ;;  %2596 = vrsqrt.f32 %v2904_v15  ;;  %vm625_vm11 = vcmp.eq.f32.partialorder %v2900_v14, 0.0  ;;  %vm599_vm12 = vcmp.eq.f32.partialorder %v2904_v15, inf }
  0x18   : > { %v349_v20 = vmul.f32 %v2587_v18, %v2873_v6  ;;  %2598 = vrsqrt.f32 %v2908_v16  ;;  %vm575_vm13 = vcmp.eq.f32.partialorder %v2908_v16, inf  ;;  %vm601_vm14 = vcmp.eq.f32.partialorder %v2904_v15, 0.0 }
  0x19   : > { %v362_v22 = vmul.f32 %v2585_v17, %v361_v19  ;;  %v2589_v24 = vpop.eup %2588  ;;  %2600 = vrsqrt.f32 %v2928_v31  ;;  %vm577_vm15 = vcmp.eq.f32.partialorder %v2908_v16, 0.0 }
  0x1a   : > { %v350_v25 = vmul.f32 %v2587_v18, %v349_v20  ;;  %v2591_v27 = vpop.eup %2590  ;;  %v605_v29 = vmul.f32 %v2589_v24, %v2891_v11  ;;  %2602 = vrsqrt.f32 %v2886_v10 }
  0x1b   : > { %v363_v28 = vmul.f32 0.5, %v362_v22  ;;  %v2593_v32 = vpop.eup %2592  ;;  %v581_v34 = vmul.f32 %v2591_v27, %v2894_v12 }
  0x1c   : > { %v351_v33 = vmul.f32 0.5, %v350_v25  ;;  %v2595_v37 = vpop.eup %2594  ;;  %v606_v39 = vmul.f32 %v2589_v24, %v605_v29  ;;  %v557_v40 = vmul.f32 %v2593_v32, %v2897_v13 }
  0x1d   : > { %v364_v38 = vsub.f32 1.5, %v363_v28  ;;  %v2597_v41 = vpop.eup %2596  ;;  %v582_v43 = vmul.f32 %v2591_v27, %v581_v34  ;;  %v617_v44 = vmul.f32 %v2595_v37, %v2900_v14  ;;  %v2959_v28 = vld [vmem:[%s2856_s14 + $0x38] sm:$0xff] }
  0x1e   : > { %v352_v42 = vsub.f32 1.5, %v351_v33  ;;  %v2599_v45 = vpop.eup %2598  ;;  %v607_v47 = vmul.f32 0.5, %v606_v39  ;;  %v558_v48 = vmul.f32 %v2593_v32, %v557_v40  ;;  %v593_v49 = vmul.f32 %v2597_v41, %v2904_v15  ;;  %v2967_v40 = vld [vmem:[%s2856_s14 + $0x30] sm:$0xff] }
  0x1f   : > { %v365_v46 = vmul.f32 %v2585_v17, %v364_v38  ;;  %v583_v51 = vmul.f32 0.5, %v582_v43  ;;  %v618_v52 = vmul.f32 %v2595_v37, %v617_v44  ;;  %v569_v53 = vmul.f32 %v2599_v45, %v2908_v16  ;;  %v2601_v62 = vpop.eup %2600 }
  0x20   : > { %v353_v50 = vmul.f32 %v2587_v18, %v352_v42  ;;  %v608_v55 = vsub.f32 1.5, %v607_v47  ;;  %v559_v56 = vmul.f32 0.5, %v558_v48  ;;  %v594_v57 = vmul.f32 %v2597_v41, %v593_v49  ;;  %v2951_v18 = vpop.eup %2602 }
  0x21   : > { %v366_v54 = vmul.f32 %v365_v46, %v2865_v3  ;;  %v584_v59 = vsub.f32 1.5, %v583_v51  ;;  %v619_v60 = vmul.f32 0.5, %v618_v52  ;;  %v570_v61 = vmul.f32 %v2599_v45, %v569_v53  ;;  %v3016_v53 = vld [vmem:[%s2856_s14 + $0x68] sm:$0xff] }
  0x22   : > { %v354_v58 = vmul.f32 %v353_v50, %v2873_v6  ;;  %v609_v4 = vmul.f32 %v2589_v24, %v608_v55  ;;  %v560_v5 = vsub.f32 1.5, %v559_v56  ;;  %v595_v17 = vmul.f32 0.5, %v594_v57  ;;  %v3022_v57 = vld [vmem:[%s2856_s14 + $0x40] sm:$0xff] }
  0x23   : > { %v368_v63 = vsel %vm367_vm0, %v2865_v3, %v366_v54  ;;  %v585_v22 = vmul.f32 %v2591_v27, %v584_v59  ;;  %v620_v25 = vsub.f32 1.5, %v619_v60  ;;  %v571_v38 = vmul.f32 0.5, %v570_v61 }
  0x24   : > { %v371_v19 = vsel %vm369_vm1, %v370_v23, %v368_v63  ;;  %v356_v20 = vsel %vm355_vm2, %v2873_v6, %v354_v58  ;;  %v610_v29 = vmul.f32 %v609_v4, %v2891_v11  ;;  %v561_v33 = vmul.f32 %v2593_v32, %v560_v5 }
  0x25   : > { %771 = vperm.xlu1 %2579, %v371_v19   ;;  %v359_v24 = vsel %vm357_vm3, %v358_v26, %v356_v20  ;;  %v596_v34 = vsub.f32 1.5, %v595_v17  ;;  %v586_v3 = vmul.f32 %v585_v22, %v2894_v12  ;;  %v621_v23 = vmul.f32 %v2595_v37, %v620_v25 }
  0x26   : > { %766 = vperm.xlu0 %2578, %v359_v24   ;;  %v701_v39 = vmul.f32 %v2601_v62, %v2928_v31  ;;  %v612_v27 = vsel %vm611_vm4, %v2891_v11, %v610_v29  ;;  %v562_v6 = vmul.f32 %v561_v33, %v2897_v13  ;;  %v2974_v42 = vsub.f32 1.0, %v2959_v28  ;;  %v3046_v29 = vld [vmem:[%s2856_s14 + $0x48] sm:$0xff]  ;;  %v3049_v33 = vld [vmem:[%s2856_s14 + $0x78] sm:$0xff] }
  0x27   : > { %v597_v26 = vmul.f32 %v2597_v41, %v596_v34  ;;  %v615_v32 = vsel %vm613_vm5, %v614_v30, %v612_v27  ;;  %v588_v37 = vsel %vm587_vm6, %v2894_v12, %v586_v3  ;;  %v622_v43 = vmul.f32 %v621_v23, %v2900_v14 }
  0x28   : > { %v572_v44 = vsub.f32 1.5, %v571_v38  ;;  %882 = vperm.xlu2 %2580, %v615_v32   ;;  %v564_v41 = vsel %vm563_vm7, %v2897_v13, %v562_v6  ;;  %v702_v46 = vmul.f32 %v2601_v62, %v701_v39  ;;  %v2989_v47 = vsub.f32 1.0, %v2967_v40 }
  0x29   : > { %v591_v11 = vsel %vm589_vm8, %v590_v35, %v588_v37  ;;  %v626_v30 = vand.u32 2147483648, %v2900_v14  ;;  %v598_v48 = vmul.f32 %v597_v26, %v2904_v15  ;;  %v567_v50 = vsel %vm565_vm9, %v566_v36, %v564_v41 }
  0x2a   : > { %v573_v49 = vmul.f32 %v2599_v45, %v572_v44  ;;  %v624_v51 = vsel %vm623_vm10, %v2900_v14, %v622_v43  ;;  %v703_v52 = vmul.f32 0.5, %v702_v46  ;;  %2604 = vrsqrt.f32 %v2974_v42  ;;  %v3067_v43 = vld [vmem:[%s2856_s14 + $0x70] sm:$0xff] }
  0x2b   : > { %2606 = vrsqrt.f32 %v2989_v47  ;;  %v627_v13 = vsel %vm625_vm11, %v626_v30, %v624_v51  ;;  %v602_v36 = vand.u32 2147483648, %v2904_v15  ;;  %v385_v45 = vmul.f32 %v2951_v18, %v2886_v10 }
  0x2c   : > { %v574_v12 = vmul.f32 %v573_v49, %v2908_v16  ;;  %v704_v35 = vsub.f32 1.5, %v703_v52  ;;  %v600_v54 = vsel %vm599_vm12, %v2904_v15, %v598_v48  ;;  %v578_v55 = vand.u32 2147483648, %v2908_v16 }
  0x2d   : > { %872 = vperm.xlu1 %2579, %v591_v11   ;;  %vm707_vm0 = vcmp.eq.f32.partialorder %v2928_v31, inf  ;;  %v386_v58 = vmul.f32 %v2951_v18, %v385_v45  ;;  %2608 = vrsqrt.f32 %v2879_v8  ;;  %v710_v61 = vand.u32 2147483648, %v2928_v31 }
  0x2e   : > { %862 = vperm.xlu0 %2578, %v567_v50   ;;  %v705_v56 = vmul.f32 %v2601_v62, %v704_v35  ;;  %v576_v14 = vsel %vm575_vm13, %v2908_v16, %v574_v12  ;;  %v3031_v62 = vsub.f32 1.0, %v3016_v53  ;;  %v603_v63 = vsel %vm601_vm14, %v602_v36, %v600_v54 }
  0x2f   : > { %v387_v5 = vmul.f32 0.5, %v386_v58  ;;  %v3037_v17 = vsub.f32 1.0, %v3022_v57  ;;  %v579_v20 = vsel %vm577_vm15, %v578_v55, %v576_v14  ;;  %vm709_vm1 = vcmp.eq.f32.partialorder %v2928_v31, 0.0  ;;  %v3092_v58 = vld [vmem:[%s2850_s11 + $0x10] sm:$0xff] }
  0x30   : > { %v2605_v59 = vpop.eup %2604  ;;  %887 = vperm.xlu2 %2580, %v627_v13   ;;  %v706_v60 = vmul.f32 %v705_v56, %v2928_v31  ;;  %2610 = vrsqrt.f32 %v3031_v62  ;;  %vm647_vm2 = vcmp.eq.f32.partialorder %v2974_v42, inf  ;;  %vm649_vm3 = vcmp.eq.f32.partialorder %v2974_v42, 0.0 }
  0x31   : > { %v641_v4 = vmul.f32 %v2605_v59, %v2974_v42  ;;  %v2607_v19 = vpop.eup %2606  ;;  %v388_v24 = vsub.f32 1.5, %v387_v5  ;;  %v650_v16 = vand.u32 2147483648, %v2974_v42  ;;  %2612 = vrsqrt.f32 %v3037_v17 }
  0x32   : > { %v708_v22 = vsel %vm707_vm0, %v2928_v31, %v706_v60  ;;  %v629_v15 = vmul.f32 %v2607_v19, %v2989_v47  ;;  %vm391_vm4 = vcmp.eq.f32.partialorder %v2886_v10, inf  ;;  %v3059_v27 = vsub.f32 1.0, %v3046_v29 }
  0x33   : > { %v642_v25 = vmul.f32 %v2605_v59, %v641_v4  ;;  %v2609_v31 = vpop.eup %2608  ;;  %v711_v34 = vsel %vm709_vm1, %v710_v61, %v708_v22  ;;  %v389_v38 = vmul.f32 %v2951_v18, %v388_v24  ;;  %v3062_v6 = vsub.f32 1.0, %v3049_v33 }
  0x34   : > { %v630_v23 = vmul.f32 %v2607_v19, %v629_v15  ;;  %v373_v39 = vmul.f32 %v2609_v31, %v2879_v8  ;;  %vm635_vm5 = vcmp.eq.f32.partialorder %v2989_v47, inf  ;;  %vm393_vm6 = vcmp.eq.f32.partialorder %v2886_v10, 0.0 }
  0x35   : > { %877 = vperm.xlu1 %2579, %v603_v63   ;;  %v643_v3 = vmul.f32 0.5, %v642_v25  ;;  %v390_v37 = vmul.f32 %v389_v38, %v2886_v10  ;;  %v394_v18 = vand.u32 2147483648, %v2886_v10  ;;  %2614 = vrsqrt.f32 %v3059_v27 }
  0x36   : > { %867 = vperm.xlu0 %2578, %v579_v20   ;;  %v631_v32 = vmul.f32 0.5, %v630_v23  ;;  %v2611_v44 = vpop.eup %2610  ;;  %v374_v41 = vmul.f32 %v2609_v31, %v373_v39  ;;  %vm637_vm7 = vcmp.eq.f32.partialorder %v2989_v47, 0.0  ;;  %2616 = vrsqrt.f32 %v3062_v6 }
  0x37   : > { %v644_v26 = vsub.f32 1.5, %v643_v3  ;;  %v392_v30 = vsel %vm391_vm4, %v2886_v10, %v390_v37  ;;  %v713_v48 = vmul.f32 %v2611_v44, %v3031_v62  ;;  %v2613_v49 = vpop.eup %2612  ;;  %v3079_v51 = vsub.f32 1.0, %v3067_v43 }
  0x38   : > { %922 = vperm.xlu2 %2580, %v711_v34   ;;  %v632_v11 = vsub.f32 1.5, %v631_v32  ;;  %v375_v50 = vmul.f32 0.5, %v374_v41  ;;  %v653_v13 = vmul.f32 %v2613_v49, %v3037_v17  ;;  %v638_v36 = vand.u32 2147483648, %v2989_v47 }
  0x39   : > { %v645_v46 = vmul.f32 %v2605_v59, %v644_v26  ;;  %v714_v35 = vmul.f32 %v2611_v44, %v713_v48  ;;  %v395_v45 = vsel %vm393_vm6, %v394_v18, %v392_v30  ;;  %vm379_vm8 = vcmp.eq.f32.partialorder %v2879_v8, inf }
  0x3a   : > { %v633_v12 = vmul.f32 %v2607_v19, %v632_v11  ;;  %v376_v54 = vsub.f32 1.5, %v375_v50  ;;  %v654_v59 = vmul.f32 %v2613_v49, %v653_v13  ;;  %vm381_vm9 = vcmp.eq.f32.partialorder %v2879_v8, 0.0  ;;  %v3125_v11 = vld [vmem:[%s2856_s14 + $0x50] sm:$0xff] }
  0x3b   : > { %v646_v52 = vmul.f32 %v645_v46, %v2974_v42  ;;  %v715_v14 = vmul.f32 0.5, %v714_v35  ;;  %v2615_v60 = vpop.eup %2614  ;;  %2618 = vrsqrt.f32 %v3079_v51  ;;  %v382_v25 = vand.u32 2147483648, %v2879_v8 }
  0x3c   : > { %v634_v56 = vmul.f32 %v633_v12, %v2989_v47  ;;  %v377_v63 = vmul.f32 %v2609_v31, %v376_v54  ;;  %v655_v5 = vmul.f32 0.5, %v654_v59  ;;  %v665_v19 = vmul.f32 %v2615_v60, %v3059_v27  ;;  %v2617_v20 = vpop.eup %2616 }
  0x3d   : > { %v648_v55 = vsel %vm647_vm2, %v2974_v42, %v646_v52  ;;  %v716_v4 = vsub.f32 1.5, %v715_v14  ;;  %v1071_v15 = vpack.c.bf16 %v3092_v58, %v3092_v58  ;;  %v737_v34 = vmul.f32 %v2617_v20, %v3062_v6 }
  0x3e   : > { %v651_v61 = vsel %vm649_vm3, %v650_v16, %v648_v55  ;;  %v636_v10 = vsel %vm635_vm5, %v2989_v47, %v634_v56  ;;  %v378_v42 = vmul.f32 %v377_v63, %v2879_v8  ;;  %v656_v16 = vsub.f32 1.5, %v655_v5 }
  0x3f   : > { %897 = vperm.xlu1 %2579, %v651_v61   ;;  %v639_v22 = vsel %vm637_vm7, %v638_v36, %v636_v10  ;;  %v717_v24 = vmul.f32 %v2611_v44, %v716_v4  ;;  %v666_v31 = vmul.f32 %v2615_v60, %v665_v19  ;;  %vm719_vm10 = vcmp.eq.f32.partialorder %v3031_v62, inf  ;;  %v3141_v36 = vld [vmem:[%s2850_s11 + $0x18] sm:$0xff] }
  0x40   : > { %781 = vperm.xlu2 %2580, %v395_v45   ;;  %892 = vperm.xlu0 %2578, %v639_v22   ;;  %v380_v3 = vsel %vm379_vm8, %v2879_v8, %v378_v42  ;;  %v722_v47 = vand.u32 2147483648, %v3031_v62  ;;  %2620 = vrsqrt.f32 %v2876_v7  ;;  %vm721_vm11 = vcmp.eq.f32.partialorder %v3031_v62, 0.0  ;;  %v3151_v10 = vld [vmem:[%s2856_s14 + $0x58] sm:$0xff] }
  0x41   : > { %v718_v23 = vmul.f32 %v717_v24, %v3031_v62  ;;  %v657_v38 = vmul.f32 %v2613_v49, %v656_v16  ;;  %v667_v39 = vmul.f32 0.5, %v666_v31  ;;  %v2619_v26 = vpop.eup %2618  ;;  %v383_v32 = vsel %vm381_vm9, %v382_v25, %v380_v3 }
  0x42   : > { %vm659_vm12 = vcmp.eq.f32.partialorder %v3037_v17, inf  ;;  %v738_v37 = vmul.f32 %v2617_v20, %v737_v34  ;;  %2622 = vrsqrt.f32 %v2883_v9  ;;  %v725_v46 = vmul.f32 %v2619_v26, %v3079_v51 }
  0x43   : > { %v720_v44 = vsel %vm719_vm10, %v3031_v62, %v718_v23  ;;  %v658_v18 = vmul.f32 %v657_v38, %v3037_v17  ;;  %v668_v41 = vsub.f32 1.5, %v667_v39  ;;  %vm661_vm13 = vcmp.eq.f32.partialorder %v3037_v17, 0.0 }
  0x44   : > { %v723_v30 = vsel %vm721_vm11, %v722_v47, %v720_v44  ;;  %v662_v8 = vand.u32 2147483648, %v3037_v17  ;;  %v739_v48 = vmul.f32 0.5, %v738_v37  ;;  %vm671_vm14 = vcmp.eq.f32.partialorder %v3059_v27, inf }
  0x45   : > { %v669_v49 = vmul.f32 %v2615_v60, %v668_v41  ;;  %vm673_vm15 = vcmp.eq.f32.partialorder %v3059_v27, 0.0  ;;  %v726_v62 = vmul.f32 %v2619_v26, %v725_v46  ;;  %v674_v52 = vand.u32 2147483648, %v3059_v27 }
  0x46   : > { %v2621_v50 = vpop.eup %2620  ;;  %v740_v12 = vsub.f32 1.5, %v739_v48  ;;  %v3134_v35 = vsub.f32 1.0, %v3125_v11  ;;  %2624 = vrsqrt.f32 %v2967_v40  ;;  %v660_v13 = vsel %vm659_vm12, %v3037_v17, %v658_v18 }
  0x47   : > { %776 = vperm.xlu1 %2579, %v383_v32   ;;  %v670_v45 = vmul.f32 %v669_v49, %v3059_v27  ;;  %v727_v54 = vmul.f32 0.5, %v726_v62  ;;  %v397_v55 = vmul.f32 %v2621_v50, %v2876_v7  ;;  %v663_v4 = vsel %vm661_vm13, %v662_v8, %v660_v13  ;;  %v3192_v49 = vld [vmem:[%s2850_s11 + $0x28] sm:$0xff] }
  0x48   : > { %1105 = vrot.lane.b32.xlu2 %v1071_v15, %s2787_s15  ;;  %927 = vperm.xlu0 %2578, %v723_v30   ;;  %v2623_v56 = vpop.eup %2622  ;;  %v741_v14 = vmul.f32 %v2617_v20, %v740_v12  ;;  %2626 = vrsqrt.f32 %v3134_v35  ;;  %v1072_v5 = vpack.c.bf16 %v3141_v36, %v3141_v36  ;;  %vm743_vm0 = vcmp.eq.f32.partialorder %v3062_v6, inf }
  0x49   : > { %v672_v59 = vsel %vm671_vm14, %v3059_v27, %v670_v45  ;;  %v728_v60 = vsub.f32 1.5, %v727_v54  ;;  %v398_v61 = vmul.f32 %v2621_v50, %v397_v55  ;;  %v409_v63 = vmul.f32 %v2623_v56, %v2883_v9 }
  0x4a   : > { %v675_v19 = vsel %vm673_vm15, %v674_v52, %v672_v59  ;;  %v742_v20 = vmul.f32 %v741_v14, %v3062_v6  ;;  %vm745_vm1 = vcmp.eq.f32.partialorder %v3062_v6, 0.0  ;;  %v746_v24 = vand.u32 2147483648, %v3062_v6 }
  0x4b   : > { %v729_v22 = vmul.f32 %v2619_v26, %v728_v60  ;;  %v399_v42 = vmul.f32 0.5, %v398_v61  ;;  %v410_v25 = vmul.f32 %v2623_v56, %v409_v63  ;;  %vm731_vm2 = vcmp.eq.f32.partialorder %v3079_v51, inf }
  0x4c   : > { %v2625_v15 = vpop.eup %2624  ;;  %v3165_v17 = vsub.f32 1.0, %v3151_v10  ;;  %vm733_vm3 = vcmp.eq.f32.partialorder %v3079_v51, 0.0  ;;  %v734_v3 = vand.u32 2147483648, %v3079_v51  ;;  %vm403_vm4 = vcmp.eq.f32.partialorder %v2876_v7, inf }
  0x4d   : > { %v730_v27 = vmul.f32 %v729_v22, %v3079_v51  ;;  %v400_v16 = vsub.f32 1.5, %v399_v42  ;;  %v411_v31 = vmul.f32 0.5, %v410_v25  ;;  %v421_v47 = vmul.f32 %v2625_v15, %v2967_v40 }
  0x4e   : > { %v2627_v34 = vpop.eup %2626  ;;  %2628 = vrsqrt.f32 %v3165_v17  ;;  %v744_v23 = vsel %vm743_vm0, %v3062_v6, %v742_v20  ;;  %vm405_vm5 = vcmp.eq.f32.partialorder %v2876_v7, 0.0  ;;  %v406_v32 = vand.u32 2147483648, %v2876_v7 }
  0x4f   : > { %902 = vperm.xlu1 %2579, %v663_v4   ;;  %v401_v38 = vmul.f32 %v2621_v50, %v400_v16  ;;  %v412_v39 = vsub.f32 1.5, %v411_v31  ;;  %v677_v26 = vmul.f32 %v2627_v34, %v3134_v35  ;;  %v422_v37 = vmul.f32 %v2625_v15, %v421_v47 }
  0x50   : > { %907 = vperm.xlu2 %2580, %v675_v19   ;;  %1107 = vrot.lane.b32.xlu0 %v1072_v5, %s2787_s15  ;;  %2630 = vrsqrt.f32 %v3022_v57  ;;  %v732_v44 = vsel %vm731_vm2, %v3079_v51, %v730_v27  ;;  %v747_v30 = vsel %vm745_vm1, %v746_v24, %v744_v23  ;;  %vm415_vm6 = vcmp.eq.f32.partialorder %v2883_v9, inf }
  0x51   : > { %v402_v18 = vmul.f32 %v401_v38, %v2876_v7  ;;  %v413_v41 = vmul.f32 %v2623_v56, %v412_v39  ;;  %v678_v46 = vmul.f32 %v2627_v34, %v677_v26  ;;  %v423_v8 = vmul.f32 0.5, %v422_v37  ;;  %v3228_v37 = vld [vmem:[%s2850_s11 + $0x38] sm:$0xff] }
  0x52   : > { %2632 = vrsqrt.f32 %v3016_v53  ;;  %v735_v52 = vsel %vm733_vm3, %v734_v3, %v732_v44  ;;  %v1074_v56 = vpack.c.bf16 %v3192_v49, %v3192_v49  ;;  %vm417_vm7 = vcmp.eq.f32.partialorder %v2883_v9, 0.0  ;;  %v3222_v3 = vld [vmem:[%s2850_s11 + $0x20] sm:$0xff] }
  0x53   : > { %v404_v48 = vsel %vm403_vm4, %v2876_v7, %v402_v18  ;;  %v679_v62 = vmul.f32 0.5, %v678_v46  ;;  %v424_v13 = vsub.f32 1.5, %v423_v8  ;;  %v414_v6 = vmul.f32 %v413_v41, %v2883_v9 }
  0x54   : > { %v2629_v50 = vpop.eup %2628  ;;  %v407_v12 = vsel %vm405_vm5, %v406_v32, %v404_v48  ;;  %v418_v61 = vand.u32 2147483648, %v2883_v9  ;;  %vm683_vm8 = vcmp.eq.f32.partialorder %v3134_v35, inf  ;;  %vm685_vm9 = vcmp.eq.f32.partialorder %v3134_v35, 0.0 }
  0x55   : > { %v680_v45 = vsub.f32 1.5, %v679_v62  ;;  %v689_v54 = vmul.f32 %v2629_v50, %v3165_v17  ;;  %v425_v7 = vmul.f32 %v2625_v15, %v424_v13  ;;  %v686_v63 = vand.u32 2147483648, %v3134_v35 }
  0x56   : > { %v2631_v55 = vpop.eup %2630  ;;  %v416_v4 = vsel %vm415_vm6, %v2883_v9, %v414_v6  ;;  %vm427_vm10 = vcmp.eq.f32.partialorder %v2967_v40, inf  ;;  %v430_v31 = vand.u32 2147483648, %v2967_v40  ;;  %vm429_vm11 = vcmp.eq.f32.partialorder %v2967_v40, 0.0 }
  0x57   : > { %937 = vperm.xlu1 %2579, %v747_v30   ;;  %v681_v51 = vmul.f32 %v2627_v34, %v680_v45  ;;  %v690_v14 = vmul.f32 %v2629_v50, %v689_v54  ;;  %v445_v59 = vmul.f32 %v2631_v55, %v3022_v57  ;;  %v426_v42 = vmul.f32 %v425_v7, %v2967_v40 }
  0x58   : > { %786 = vperm.xlu2 %2580, %v407_v12   ;;  %932 = vperm.xlu0 %2578, %v735_v52   ;;  %v2633_v60 = vpop.eup %2632  ;;  %v419_v15 = vsel %vm417_vm7, %v418_v61, %v416_v4  ;;  %v1073_v38 = vpack.c.bf16 %v3222_v3, %v3222_v3  ;;  %vm695_vm12 = vcmp.eq.f32.partialorder %v3165_v17, inf  ;;  %v698_v44 = vand.u32 2147483648, %v3165_v17 }
  0x59   : > { %v682_v5 = vmul.f32 %v681_v51, %v3134_v35  ;;  %v691_v19 = vmul.f32 0.5, %v690_v14  ;;  %v505_v20 = vmul.f32 %v2633_v60, %v3016_v53  ;;  %v446_v25 = vmul.f32 %v2631_v55, %v445_v59 }
  0x5a   : > { %v1076_v18 = vpack.c.bf16 %v3228_v37, %v3228_v37  ;;  %vm697_vm13 = vcmp.eq.f32.partialorder %v3165_v17, 0.0  ;;  %vm451_vm14 = vcmp.eq.f32.partialorder %v3022_v57, inf  ;;  %v454_v62 = vand.u32 2147483648, %v3022_v57 }
  0x5b   : > { %v684_v22 = vsel %vm683_vm8, %v3134_v35, %v682_v5  ;;  %v692_v27 = vsub.f32 1.5, %v691_v19  ;;  %v506_v16 = vmul.f32 %v2633_v60, %v505_v20  ;;  %v428_v35 = vsel %vm427_vm10, %v2967_v40, %v426_v42 }
  0x5c   : > { %v687_v24 = vsel %vm685_vm9, %v686_v63, %v684_v22  ;;  %v447_v34 = vmul.f32 0.5, %v446_v25  ;;  %v431_v23 = vsel %vm429_vm11, %v430_v31, %v428_v35  ;;  %vm511_vm15 = vcmp.eq.f32.partialorder %v3016_v53, inf }
  0x5d   : > { %v693_v9 = vmul.f32 %v2629_v50, %v692_v27  ;;  %v507_v47 = vmul.f32 0.5, %v506_v16  ;;  %vm453_vm0 = vcmp.eq.f32.partialorder %v3022_v57, 0.0  ;;  %vm513_vm1 = vcmp.eq.f32.partialorder %v3016_v53, 0.0 }
  0x5e   : > { %v448_v39 = vsub.f32 1.5, %v447_v34  ;;  %2634 = vrsqrt.f32 %v2959_v28  ;;  %vm439_vm2 = vcmp.eq.f32.partialorder %v2959_v28, inf  ;;  %v442_v25 = vand.u32 2147483648, %v2959_v28 }
  0x5f   : > { %1111 = vrot.lane.b32.xlu1 %v1074_v56, %s2787_s15  ;;  %v694_v26 = vmul.f32 %v693_v9, %v3165_v17  ;;  %v508_v32 = vsub.f32 1.5, %v507_v47  ;;  %2636 = vrsqrt.f32 %v2917_v21  ;;  %vm441_vm3 = vcmp.eq.f32.partialorder %v2959_v28, 0.0 }
  0x60   : > { %912 = vperm.xlu2 %2580, %v687_v24   ;;  %791 = vperm.xlu0 %2578, %v419_v15   ;;  %v449_v40 = vmul.f32 %v2631_v55, %v448_v39  ;;  %2638 = vrsqrt.f32 %v3046_v29  ;;  %vm499_vm4 = vcmp.eq.f32.partialorder %v2917_v21, inf  ;;  %vm501_vm5 = vcmp.eq.f32.partialorder %v2917_v21, 0.0 }
  0x61   : > { %v696_v41 = vsel %vm695_vm12, %v3165_v17, %v694_v26  ;;  %v509_v46 = vmul.f32 %v2633_v60, %v508_v32  ;;  %v514_v17 = vand.u32 2147483648, %v3016_v53  ;;  %2640 = vrsqrt.f32 %v3049_v33 }
  0x62   : > { %v450_v30 = vmul.f32 %v449_v40, %v3022_v57  ;;  %v699_v8 = vsel %vm697_vm13, %v698_v44, %v696_v41  ;;  %v3288_v41 = vld [vmem:[%s2850_s11 + $0x60] sm:$0xff]  ;;  %2642 = vrsqrt.f32 %v3067_v43  ;;  %vm463_vm6 = vcmp.eq.f32.partialorder %v3046_v29, inf }
  0x63   : > { %v510_v48 = vmul.f32 %v509_v46, %v3016_v53  ;;  %2644 = vrsqrt.f32 %v3125_v11  ;;  %vm465_vm7 = vcmp.eq.f32.partialorder %v3046_v29, 0.0  ;;  %vm535_vm8 = vcmp.eq.f32.partialorder %v3049_v33, inf }
  0x64   : > { %v452_v50 = vsel %vm451_vm14, %v3022_v57, %v450_v30  ;;  %v2635_v6 = vpop.eup %2634  ;;  %2646 = vrsqrt.f32 %v3151_v10  ;;  %vm537_vm9 = vcmp.eq.f32.partialorder %v3049_v33, 0.0  ;;  %vm523_vm10 = vcmp.eq.f32.partialorder %v3067_v43, inf }
  0x65   : > { %v512_v52 = vsel %vm511_vm15, %v3016_v53, %v510_v48  ;;  %v455_v12 = vsel %vm453_vm0, %v454_v62, %v452_v50  ;;  %v433_v54 = vmul.f32 %v2635_v6, %v2959_v28  ;;  %v2637_v55 = vpop.eup %2636  ;;  %v1081_v48 = vpack.c.bf16 %v3288_v41, %v3288_v41 }
  0x66   : > { %v515_v13 = vsel %vm513_vm1, %v514_v17, %v512_v52  ;;  %v493_v53 = vmul.f32 %v2637_v55, %v2917_v21  ;;  %v2639_v47 = vpop.eup %2638  ;;  %vm525_vm11 = vcmp.eq.f32.partialorder %v3067_v43, 0.0  ;;  %vm475_vm12 = vcmp.eq.f32.partialorder %v3125_v11, inf }
  0x67   : > { %796 = vperm.xlu1 %2579, %v431_v23   ;;  %v434_v57 = vmul.f32 %v2635_v6, %v433_v54  ;;  %v502_v23 = vand.u32 2147483648, %v2917_v21  ;;  %vm477_vm13 = vcmp.eq.f32.partialorder %v3125_v11, 0.0  ;;  %vm487_vm14 = vcmp.eq.f32.partialorder %v3151_v10, inf }
  0x68   : > { %1109 = vrot.lane.b32.xlu0 %v1073_v38, %s2787_s15  ;;  %v494_v60 = vmul.f32 %v2637_v55, %v493_v53  ;;  %vm489_vm15 = vcmp.eq.f32.partialorder %v3151_v10, 0.0  ;;  %vm1052_vm0 = vcmask 257024   ;;  %vm1149_vm1 = vcmask 781568  }
  0x69   : > { %v435_v51 = vmul.f32 0.5, %v434_v57 }
  0x6a   : > { %v495_v4 = vmul.f32 0.5, %v494_v60 }
  0x6b   : > { %v3253_v56 = vpop.permute.xlu2 %1103  ;;  %v436_v59 = vsub.f32 1.5, %v435_v51  ;;  %v3304_v51 = vld [vmem:[%s2850_s11 + $0x68] sm:$0xff] }
  0x6c   : > { %v496_v42 = vsub.f32 1.5, %v495_v4  ;;  %v1082_v53 = vpack.c.bf16 %v3304_v51, %v3304_v51 }
  0x6d   : > { %v437_v63 = vmul.f32 %v2635_v6, %v436_v59 }
  0x6e   : > { %v497_v24 = vmul.f32 %v2637_v55, %v496_v42 }
  0x6f   : > { %1115 = vrot.lane.b32.xlu1 %v1076_v18, %s2787_s15  ;;  %v438_v22 = vmul.f32 %v437_v63, %v2959_v28  ;;  %v2641_v18 = vpop.eup %2640 }
  0x70   : > { %917 = vperm.xlu0 %2578, %v699_v8   ;;  %v498_v9 = vmul.f32 %v497_v24, %v2917_v21  ;;  %v529_v8 = vmul.f32 %v2641_v18, %v3049_v33 }
  0x71   : > { %v440_v15 = vsel %vm439_vm2, %v2959_v28, %v438_v22  ;;  %v3275_v28 = vld [vmem:[%s2850_s11 + $0x30] sm:$0xff]  ;;  %vm1166_vm2 = vcmask 1044224  }
  0x72   : > { %v443_v35 = vsel %vm441_vm3, %v442_v25, %v440_v15  ;;  %v500_v38 = vsel %vm499_vm4, %v2917_v21, %v498_v9  ;;  %v1075_v26 = vpack.c.bf16 %v3275_v28, %v3275_v28  ;;  %v530_v52 = vmul.f32 %v2641_v18, %v529_v8  ;;  %v3322_v25 = vld [vmem:[%s2850_s11 + $0x48] sm:$0xff] }
  0x73   : > { %v503_v32 = vsel %vm501_vm5, %v502_v23, %v500_v38  ;;  %v538_v23 = vand.u32 2147483648, %v3049_v33  ;;  %v526_v8 = vand.u32 2147483648, %v3067_v43 }
  0x74   : > { %v531_v57 = vmul.f32 0.5, %v530_v52  ;;  %v3355_v52 = vld [vmem:[%s2850_s11 + $0x40] sm:$0xff] }
  0x76   : > { %v532_v4 = vsub.f32 1.5, %v531_v57 }
  0x77   : > { %806 = vperm.xlu1 %2579, %v455_v12   ;;  %v2643_v12 = vpop.eup %2642 }
  0x78   : > { %831 = vperm.xlu0 %2578, %v515_v13   ;;  %v517_v55 = vmul.f32 %v2643_v12, %v3067_v43  ;;  %v2645_v60 = vpop.eup %2644  ;;  %v533_v24 = vmul.f32 %v2641_v18, %v532_v4 }
  0x79   : > { %v469_v22 = vmul.f32 %v2645_v60, %v3125_v11 }
  0x82   : > { %v883_v61 = vpop.permute.xlu2 %882 }
  0x83   : > { %v3250_v45 = vpop.permute.xlu1 %1101  ;;  %v944_v39 = vmul.f32 %v883_v61, %v3222_v3 }
  0x8a   : > { %v888_v27 = vpop.permute.xlu2 %887 }
  0x8b   : > { %v945_v61 = vmul.f32 %v888_v27, %v3192_v49 }
  0x92   : > { %v923_v40 = vpop.permute.xlu2 %922 }
  0x93   : > { %v952_v59 = vmul.f32 %v923_v40, %v3288_v41 }
  0x97   : > { %v3256_v7 = vpop.permute.xlu1 %771 }
  0x98   : > { %v3258_v14 = vpop.permute.xlu0 %766 }
  0x9a   : > { %v3297_v13 = vpop.permute.xlu2 %781 }
  0x9f   : > { %v873_v5 = vpop.permute.xlu1 %872 }
  0xa0   : > { %v863_v19 = vpop.permute.xlu0 %862  ;;  %v942_v50 = vmul.f32 %v873_v5, %v3092_v58  ;;  %v518_v5 = vmul.f32 %v2643_v12, %v517_v55 }
  0xa1   : > { %v940_v20 = vmul.f32 %v863_v19, %v2859_v1 }
  0xa2   : > { %v3319_v42 = vpop.permute.xlu2 %1105  ;;  %v519_v27 = vmul.f32 0.5, %v518_v5 }
  0xa3   : > { %972 = vrot.lane.b32.xlu2 %v940_v20, %s2787_s15  ;;  %v466_v20 = vand.u32 2147483648, %v3046_v29 }
  0xa4   : > { %v520_v9 = vsub.f32 1.5, %v519_v27 }
  0xa7   : > { %v878_v16 = vpop.permute.xlu1 %877 }
  0xa8   : > { %v943_v1 = vmul.f32 %v878_v16, %v3141_v36  ;;  %v868_v31 = vpop.permute.xlu0 %867  ;;  %v1078_v16 = vpack.c.bf16 %v3322_v25, %v3322_v25 }
  0xa9   : > { %v941_v34 = vmul.f32 %v868_v31, %v2862_v2  ;;  %v457_v2 = vmul.f32 %v2639_v47, %v3046_v29  ;;  %v470_v31 = vmul.f32 %v2645_v60, %v469_v22 }
  0xaa   : > { %978 = vrot.lane.b32.xlu1 %v943_v1, %s2787_s15 }
  0xab   : > { %801 = vperm.xlu2 %2580, %v443_v35   ;;  %974 = vrot.lane.b32.xlu0 %v941_v34, %s2787_s15  ;;  %v458_v44 = vmul.f32 %v2639_v47, %v457_v2  ;;  %v534_v34 = vmul.f32 %v533_v24, %v3049_v33  ;;  %v471_v38 = vmul.f32 0.5, %v470_v31  ;;  %v3379_v24 = vld [vmem:[%s2850_s11 + $0x58] sm:$0xff] }
  0xad   : > { %v459_v30 = vmul.f32 0.5, %v458_v44  ;;  %v536_v2 = vsel %vm535_vm8, %v3049_v33, %v534_v34  ;;  %v472_v44 = vsub.f32 1.5, %v471_v38  ;;  %v490_v34 = vand.u32 2147483648, %v3151_v10  ;;  %v2527_v38 = vld [vmem:[%s4139_s2 + $0x38] sm:$0xff] }
  0xae   : > { %v539_v40 = vsel %vm537_vm9, %v538_v23, %v536_v2  ;;  %1315 = vmatpush.bf16.msra.mxu0 %v2527_v38  ;;  %2544 = vmatpush.bf16.msra.mxu3 %v2527_v38 }
  0xaf   : > { %v460_v17 = vsub.f32 1.5, %v459_v30 }
  0xb1   : > { %v898_v21 = vpop.permute.xlu1 %897  ;;  %v461_v54 = vmul.f32 %v2639_v47, %v460_v17 }
  0xb2   : > { %980 = vrot.lane.b32.xlu1 %v944_v39, %s2787_s15  ;;  %v893_v46 = vpop.permute.xlu0 %892  ;;  %v947_v62 = vmul.f32 %v898_v21, %v3228_v37  ;;  %v521_v39 = vmul.f32 %v2643_v12, %v520_v9  ;;  %v2647_v21 = vpop.eup %2646  ;;  %v1077_v12 = vpack.c.bf16 %v3355_v52, %v3355_v52 }
  0xb3   : > { %826 = vperm.xlu2 %2580, %v503_v32   ;;  %1113 = vrot.lane.b32.xlu0 %v1075_v26, %s2787_s15  ;;  %v462_v63 = vmul.f32 %v461_v54, %v3046_v29  ;;  %v946_v35 = vmul.f32 %v893_v46, %v3275_v28  ;;  %v908_v26 = vpop.permute.xlu2 %907  ;;  %v481_v17 = vmul.f32 %v2647_v21, %v3151_v10 }
  0xb4   : > { %v949_v32 = vmul.f32 %v908_v26, %v3322_v25  ;;  %v522_v46 = vmul.f32 %v521_v39, %v3067_v43  ;;  %v2526_v39 = vld [vmem:[%s4139_s2 + $0x30] sm:$0xff] }
  0xb5   : > { %v464_v15 = vsel %vm463_vm6, %v3046_v29, %v462_v63  ;;  %v482_v55 = vmul.f32 %v2647_v21, %v481_v17  ;;  %1316 = vmatpush.bf16.msra.mxu0 %v2526_v39  ;;  %2545 = vmatpush.bf16.msra.mxu3 %v2526_v39  ;;  %v2523_v17 = vld [vmem:[%s4139_s2 + $0x18] sm:$0xff] }
  0xb6   : > { %v467_v1 = vsel %vm465_vm7, %v466_v20, %v464_v15 }
  0xb9   : > { %v3330_v47 = vpop.permute.xlu1 %776 }
  0xba   : > { %986 = vrot.lane.b32.xlu1 %v947_v62, %s2787_s15  ;;  %v928_v6 = vpop.permute.xlu0 %927  ;;  %v3349_v62 = vld [vmem:[%s2850_s11 + $0x70] sm:$0xff] }
  0xbb   : > { %1125 = vrot.lane.b32.xlu2 %v1081_v48, %s2787_s15  ;;  %976 = vrot.lane.b32.xlu0 %v942_v50, %s2787_s15  ;;  %v953_v18 = vmul.f32 %v928_v6, %v3304_v51  ;;  %v473_v48 = vmul.f32 %v2645_v60, %v472_v44  ;;  %v524_v50 = vsel %vm523_vm10, %v3067_v43, %v522_v46  ;;  %v478_v43 = vand.u32 2147483648, %v3125_v11  ;;  %v3376_v15 = vpop.permute.xlu2 %786  ;;  %v2776_v46 = vld [vmem:[%s2850_s11] sm:$0xff] }
  0xbc   : > { %v527_v54 = vsel %vm525_vm11, %v526_v8, %v524_v50  ;;  %v483_v60 = vmul.f32 0.5, %v482_v55 }
  0xbd   : > { %v474_v57 = vmul.f32 %v473_v48, %v3125_v11 }
  0xbe   : > { %v484_v22 = vsub.f32 1.5, %v483_v60  ;;  %v847_v60 = vmul.f32 %v3297_v13, %v3141_v36  ;;  %v848_v36 = vmul.f32 %v3376_v15, %v3222_v3  ;;  %v846_v15 = vmul.f32 %v3330_v47, %v3092_v58 }
  0xc0   : > { %v485_v27 = vmul.f32 %v2647_v21, %v484_v22  ;;  %v844_v21 = vmul.f32 %v2776_v46, %v3258_v14 }
  0xc1   : > { %v903_v33 = vpop.permute.xlu1 %902 }
  0xc2   : > { %996 = vrot.lane.b32.xlu1 %v952_v59, %s2787_s15  ;;  %v3315_v19 = vpop.permute.xlu0 %1107  ;;  %v476_v59 = vsel %vm475_vm12, %v3125_v11, %v474_v57  ;;  %v948_v5 = vmul.f32 %v903_v33, %v3355_v52 }
  0xc3   : > { %982 = vrot.lane.b32.xlu2 %v945_v61, %s2787_s15  ;;  %1127 = vrot.lane.b32.xlu0 %v1082_v53, %s2787_s15  ;;  %v3370_v61 = vld [vmem:[%s2850_s11 + $0x78] sm:$0xff]  ;;  %v479_v4 = vsel %vm477_vm13, %v478_v43, %v476_v59  ;;  %v913_v23 = vpop.permute.xlu2 %912 }
  0xc9   : > { %v938_v63 = vpop.permute.xlu1 %937 }
  0xca   : > { %1119 = vrot.lane.b32.xlu1 %v1078_v16, %s2787_s15  ;;  %v933_v29 = vpop.permute.xlu0 %932  ;;  %v955_v20 = vmul.f32 %v938_v63, %v3370_v61  ;;  %v1084_v16 = vpack.c.bf16 %v3370_v61, %v3370_v61 }
  0xcb   : > { %811 = vperm.xlu2 %2580, %v467_v1   ;;  %984 = vrot.lane.b32.xlu0 %v946_v35, %s2787_s15  ;;  %v954_v6 = vmul.f32 %v933_v29, %v3349_v62  ;;  %v1083_v1 = vpack.c.bf16 %v3349_v62, %v3349_v62  ;;  %v486_v35 = vmul.f32 %v485_v27, %v3151_v10  ;;  %v3395_v29 = vld [vmem:[%s2850_s11 + $0x50] sm:$0xff] }
  0xcc   : > { %v950_v26 = vmul.f32 %v913_v23, %v3395_v29  ;;  %v1079_v44 = vpack.c.bf16 %v3395_v29, %v3395_v29 }
  0xcd   : > { %v488_v9 = vsel %vm487_vm14, %v3151_v10, %v486_v35  ;;  %v2525_v10 = vld [vmem:[%s4139_s2 + $0x28] sm:$0xff] }
  0xce   : > { %v491_v2 = vsel %vm489_vm15, %v490_v34, %v488_v9  ;;  %1317 = vmatpush.bf16.msra.mxu0 %v2525_v10  ;;  %2546 = vmatpush.bf16.msra.mxu3 %v2525_v10 }
  0xd2   : > { %990 = vrot.lane.b32.xlu1 %v949_v32, %s2787_s15  ;;  %v3345_v30 = vpop.permute.xlu0 %791  ;;  %v1112_v32 = vpop.permute.xlu1 %1111 }
  0xd3   : > { %841 = vperm.xlu0 %2578, %v539_v40   ;;  %998 = vrot.lane.b32.xlu2 %v953_v18, %s2787_s15  ;;  %v1080_v40 = vpack.c.bf16 %v3379_v24, %v3379_v24  ;;  %v2524_v18 = vld [vmem:[%s4139_s2 + $0x20] sm:$0xff]  ;;  %v849_v63 = vmul.f32 %v3345_v30, %v3192_v49 }
  0xd4   : > { %1318 = vmatpush.bf16.msra.mxu0 %v2524_v18  ;;  %2547 = vmatpush.bf16.msra.mxu3 %v2524_v18 }
  0xd8   : > { %1319 = vmatpush.bf16.msra.mxu0 %v2523_v17  ;;  %2548 = vmatpush.bf16.msra.mxu3 %v2523_v17 }
  0xda   : > { %1000 = vrot.lane.b32.xlu1 %v954_v6, %s2787_s15  ;;  %v3365_v53 = vpop.permute.xlu0 %1109  ;;  %v3419_v48 = vpop.permute.xlu1 %796  ;;  %v2521_v6 = vld [vmem:[%s4139_s2 + $0x8] sm:$0xff] }
  0xdb   : > { %1117 = vrot.lane.b32.xlu0 %v1077_v12, %s2787_s15  ;;  %836 = vperm.xlu2 %2580, %v527_v54   ;;  %v2522_v12 = vld [vmem:[%s4139_s2 + $0x10] sm:$0xff]  ;;  %v850_v18 = vmul.f32 %v3419_v48, %v3275_v28 }
  0xdc   : > { %1320 = vmatpush.bf16.msra.mxu0 %v2522_v12  ;;  %2549 = vmatpush.bf16.msra.mxu3 %v2522_v12 }
  0xe0   : > { %1321 = vmatpush.bf16.msra.mxu0 %v2521_v6  ;;  %2550 = vmatpush.bf16.msra.mxu3 %v2521_v6 }
  0xe2   : > { %816 = vperm.xlu1 %2579, %v479_v4   ;;  %v918_v11 = vpop.permute.xlu0 %917  ;;  %v1116_v54 = vpop.permute.xlu1 %1115 }
  0xe3   : > { %988 = vrot.lane.b32.xlu0 %v948_v5, %s2787_s15  ;;  %1002 = vrot.lane.b32.xlu2 %v955_v20, %s2787_s15  ;;  %v951_v31 = vmul.f32 %v918_v11, %v3379_v24  ;;  %v2777_v5 = vld [vmem:[%s2850_s11 + $0x8] sm:$0xff]  ;;  %s4100_s11 = scalar_lea.vmem %s4145_s8, %s2844_s30 }
  0xe4   : > { %v845_v20 = vmul.f32 %v2777_v5, %v3256_v7 }
  0xea   : > { %994 = vrot.lane.b32.xlu1 %v951_v31, %s2787_s15  ;;  %v3438_v55 = vpop.permute.xlu1 %806  ;;  %v832_v43 = vpop.permute.xlu0 %831 }
  0xeb   : > { %1131 = vrot.lane.b32.xlu0 %v1084_v16, %s2787_s15  ;;  %1129 = vrot.lane.b32.xlu2 %v1083_v1, %s2787_s15  ;;  %v857_v9 = vmul.f32 %v832_v43, %v3304_v51 }
  0xf3   : > { %992 = vrot.lane.b32.xlu0 %v950_v26, %s2787_s15  ;;  %821 = vperm.xlu2 %2580, %v491_v2  }
  0xfb   : > { %1123 = vrot.lane.b32.xlu0 %v1080_v40, %s2787_s15  ;;  %1121 = vrot.lane.b32.xlu2 %v1079_v44, %s2787_s15 }
  0xfd   : > { %v973_v33 = vpop.permute.xlu2 %972 }
  0xfe   : > { %v1020_v8 = vadd.f32 %v973_v33, %v844_v21 }
 0x100   : > { %v1036_v50 = vpack.c.bf16 %v1020_v8, %v1020_v8 }
 0x102   : > { %1053 = vst.msk [vmem:[#allocation2] sm:$0xf] %vm1052_vm0, %v1036_v50 }
 0x103   : > { %1150 = vst.msk [vmem:[#allocation2] sm:$0xf] %vm1149_vm1, %v3250_v45  ;;  %v2520_v45 = vld [vmem:[%s4139_s2] sm:$0xff] }
 0x104   : > { %1167 = vst.msk [vmem:[#allocation2] sm:$0xf] %vm1166_vm2, %v2786_v0  ;;  %1322 = vmatpush.bf16.msra.mxu0 %v2520_v45  ;;  %2551 = vmatpush.bf16.msra.mxu3 %v2520_v45 }
 0x105   : > { %v802_v14 = vpop.permute.xlu2 %801 }
 0x106   : > { %v851_v3 = vmul.f32 %v802_v14, %v3228_v37 }
 0x10d   : > { %v827_v57 = vpop.permute.xlu2 %826 }
 0x10e   : > { %v856_v58 = vmul.f32 %v827_v57, %v3288_v41 }
 0x115   : > { %v1126_v59 = vpop.permute.xlu2 %1125 }
 0x11c   : > { %v979_v4 = vpop.permute.xlu1 %978 }
 0x11d   : > { %v1023_v22 = vadd.f32 %v979_v4, %v847_v60  ;;  %v983_v11 = vpop.permute.xlu2 %982  ;;  %v975_v27 = vpop.permute.xlu0 %974 }
 0x11e   : > { %v1025_v16 = vadd.f32 %v983_v11, %v849_v63  ;;  %v1021_v31 = vadd.f32 %v975_v27, %v845_v20 }
 0x11f   : > { %v1039_v1 = vpack.c.bf16 %v1023_v22, %v1023_v22 }
 0x120   : > { %v1041_v35 = vpack.c.bf16 %v1025_v16, %v1025_v16  ;;  %v1037_v49 = vpack.c.bf16 %v1021_v31, %v1021_v31 }
 0x121   : > { %1056 = vst.msk [vmem:[#allocation2 + $0xc] sm:$0xf] %vm1052_vm0, %v1039_v1 }
 0x122   : > { %1153 = vst.msk [vmem:[#allocation2 + $0xc] sm:$0xf] %vm1149_vm1, %v3315_v19 }
 0x123   : > { %1170 = vst.msk [vmem:[#allocation2 + $0xc] sm:$0xf] %vm1166_vm2, %v2786_v0 }
 0x124   : > { %1058 = vst.msk [vmem:[#allocation2 + $0x14] sm:$0xf] %vm1052_vm0, %v1041_v35  ;;  %v981_v7 = vpop.permute.xlu1 %980 }
 0x125   : > { %1155 = vst.msk [vmem:[#allocation2 + $0x14] sm:$0xf] %vm1149_vm1, %v1112_v32  ;;  %v1024_v13 = vadd.f32 %v981_v7, %v848_v36  ;;  %v812_v30 = vpop.permute.xlu2 %811  ;;  %v1114_v34 = vpop.permute.xlu0 %1113 }
 0x126   : > { %1172 = vst.msk [vmem:[#allocation2 + $0x14] sm:$0xf] %vm1166_vm2, %v2786_v0  ;;  %v853_v50 = vmul.f32 %v812_v30, %v3322_v25 }
 0x127   : > { %1054 = vst.msk [vmem:[#allocation2 + $0x4] sm:$0xf] %vm1052_vm0, %v1037_v49  ;;  %v1040_v19 = vpack.c.bf16 %v1024_v13, %v1024_v13 }
 0x128   : > { %1151 = vst.msk [vmem:[#allocation2 + $0x4] sm:$0xf] %vm1149_vm1, %v3253_v56 }
 0x129   : > { %1168 = vst.msk [vmem:[#allocation2 + $0x4] sm:$0xf] %vm1166_vm2, %v2786_v0 }
 0x12a   : > { %1057 = vst.msk [vmem:[#allocation2 + $0x10] sm:$0xf] %vm1052_vm0, %v1040_v19 }
 0x12b   : > { %1154 = vst.msk [vmem:[#allocation2 + $0x10] sm:$0xf] %vm1149_vm1, %v3365_v53 }
 0x12c   : > { %1171 = vst.msk [vmem:[#allocation2 + $0x10] sm:$0xf] %vm1166_vm2, %v2786_v0  ;;  %v987_v23 = vpop.permute.xlu1 %986 }
 0x12d   : > { %v1027_v56 = vadd.f32 %v987_v23, %v851_v3  ;;  %v999_v38 = vpop.permute.xlu2 %998  ;;  %v977_v2 = vpop.permute.xlu0 %976  ;;  %v2535_v3 = vld [vmem:[%s4141_s4 + $0x38] sm:$0xff] }
 0x12e   : > { %v1033_v39 = vadd.f32 %v999_v38, %v857_v9  ;;  %v1022_v26 = vadd.f32 %v977_v2, %v846_v15  ;;  %1760 = vmatpush.bf16.msra.mxu1 %v2535_v3  ;;  %2552 = vmatpush.bf16.msrb.mxu3 %v2535_v3  ;;  %v2534_v15 = vld [vmem:[%s4141_s4 + $0x30] sm:$0xff]  ;;  %v2533_v9 = vld [vmem:[%s4141_s4 + $0x28] sm:$0xff]  ;;  %v2531_v23 = vld [vmem:[%s4141_s4 + $0x18] sm:$0xff] }
 0x12f   : > { %v1043_v10 = vpack.c.bf16 %v1027_v56, %v1027_v56  ;;  %v3544_v56 = vld [vmem:[%s4140_s3] ss:$0 sm:$0xff]  ;;  %v2530_v38 = vld [vmem:[%s4141_s4 + $0x10] sm:$0xff] }
 0x130   : > { %v1049_v32 = vpack.c.bf16 %v1033_v39, %v1033_v39  ;;  %v2512_v37 = vld [vmem:[#allocation2] sm:$0xff]  ;;  %v1038_v53 = vpack.c.bf16 %v1022_v26, %v1022_v26 }
 0x131   : > { %1060 = vst.msk [vmem:[#allocation2 + $0x1c] sm:$0xf] %vm1052_vm0, %v1043_v10  ;;  %1323 = vmatmul.bf16.vlgmr.msra.gmra.mxu0 %v2512_v37  ;;  %v2529_v10 = vld [vmem:[%s4141_s4 + $0x8] sm:$0xff] }
 0x132   : > { %1157 = vst.msk [vmem:[#allocation2 + $0x1c] sm:$0xf] %vm1149_vm1, %v1116_v54  ;;  %1761 = vmatpush.bf16.msra.mxu1 %v2534_v15  ;;  %2553 = vmatpush.bf16.msrb.mxu3 %v2534_v15 }
 0x133   : > { %1174 = vst.msk [vmem:[#allocation2 + $0x1c] sm:$0xf] %vm1166_vm2, %v2786_v0  ;;  %v2514_v4 = vld [vmem:[#allocation2 + $0x10] sm:$0xff] }
 0x134   : > { %1066 = vst.msk [vmem:[#allocation2 + $0x34] sm:$0xf] %vm1052_vm0, %v1049_v32  ;;  %v997_v51 = vpop.permute.xlu1 %996 }
 0x135   : > { %1055 = vst.msk [vmem:[#allocation2 + $0x8] sm:$0xf] %vm1052_vm0, %v1038_v53  ;;  %v1032_v47 = vadd.f32 %v997_v51, %v856_v58  ;;  %v1128_v40 = vpop.permute.xlu0 %1127  ;;  %v837_v41 = vpop.permute.xlu2 %836  ;;  %v2528_v53 = vld [vmem:[%s4141_s4] sm:$0xff] }
 0x136   : > { %1152 = vst.msk [vmem:[#allocation2 + $0x8] sm:$0xf] %vm1149_vm1, %v3319_v42  ;;  %v858_v57 = vmul.f32 %v837_v41, %v3349_v62  ;;  %v852_v62 = vmul.f32 %v3438_v55, %v3355_v52  ;;  %1762 = vmatpush.bf16.msra.mxu1 %v2533_v9  ;;  %2554 = vmatpush.bf16.msrb.mxu3 %v2533_v9 }
 0x137   : > { %1169 = vst.msk [vmem:[#allocation2 + $0x8] sm:$0xf] %vm1166_vm2, %v2786_v0  ;;  %v1048_v44 = vpack.c.bf16 %v1032_v47, %v1032_v47 }
 0x138   : > { %1163 = vst.msk [vmem:[#allocation2 + $0x34] sm:$0xf] %vm1149_vm1, %v1128_v40 }
 0x139   : > { %1065 = vst.msk [vmem:[#allocation2 + $0x30] sm:$0xf] %vm1052_vm0, %v1048_v44 }
 0x13a   : > { %1162 = vst.msk [vmem:[#allocation2 + $0x30] sm:$0xf] %vm1149_vm1, %v1126_v59 }
 0x13b   : > { %1179 = vst.msk [vmem:[#allocation2 + $0x30] sm:$0xf] %vm1166_vm2, %v2786_v0 }
 0x13c   : > { %1180 = vst.msk [vmem:[#allocation2 + $0x34] sm:$0xf] %vm1166_vm2, %v2786_v0  ;;  %v1120_v42 = vpop.permute.xlu1 %1119 }
 0x13d   : > { %v985_v46 = vpop.permute.xlu0 %984  ;;  %v1003_v14 = vpop.permute.xlu2 %1002 }
 0x13e   : > { %v1026_v21 = vadd.f32 %v985_v46, %v850_v18  ;;  %v2513_v33 = vld [vmem:[#allocation2 + $0x8] sm:$0xff] }
 0x140   : > { %v1042_v8 = vpack.c.bf16 %v1026_v21, %v1026_v21 }
 0x141   : > { %1328 = vmatmul.bf16.gmra.mxu0 %v2513_v33 }
 0x142   : > { %1059 = vst.msk [vmem:[#allocation2 + $0x18] sm:$0xf] %vm1052_vm0, %v1042_v8 }
 0x143   : > { %1156 = vst.msk [vmem:[#allocation2 + $0x18] sm:$0xf] %vm1149_vm1, %v1114_v34  ;;  %v2518_v17 = vld [vmem:[#allocation2 + $0x30] sm:$0xff] }
 0x144   : > { %1173 = vst.msk [vmem:[#allocation2 + $0x18] sm:$0xf] %vm1166_vm2, %v2786_v0  ;;  %v991_v28 = vpop.permute.xlu1 %990  ;;  %1353 = vmatmul.bf16.vlgmr.msra.gmra.mxu3 %v2518_v17 }
 0x145   : > { %v1029_v48 = vadd.f32 %v991_v28, %v853_v50  ;;  %v842_v12 = vpop.permute.xlu0 %841  ;;  %v1130_v63 = vpop.permute.xlu2 %1129 }
 0x146   : > { %v859_v6 = vmul.f32 %v842_v12, %v3370_v61 }
 0x147   : > { %v1045_v54 = vpack.c.bf16 %v1029_v48, %v1029_v48 }
 0x148   : > { %v1035_v45 = vadd.f32 %v1003_v14, %v859_v6 }
 0x149   : > { %1062 = vst.msk [vmem:[#allocation2 + $0x24] sm:$0xf] %vm1052_vm0, %v1045_v54 }
 0x14a   : > { %1159 = vst.msk [vmem:[#allocation2 + $0x24] sm:$0xf] %vm1149_vm1, %v1120_v42  ;;  %v1051_v25 = vpack.c.bf16 %v1035_v45, %v1035_v45 }
 0x14b   : > { %1176 = vst.msk [vmem:[#allocation2 + $0x24] sm:$0xf] %vm1166_vm2, %v2786_v0  ;;  %v2515_v52 = vld [vmem:[#allocation2 + $0x18] sm:$0xff] }
 0x14c   : > { %1068 = vst.msk [vmem:[#allocation2 + $0x3c] sm:$0xf] %vm1052_vm0, %v1051_v25  ;;  %v1001_v43 = vpop.permute.xlu1 %1000 }
 0x14d   : > { %v1034_v59 = vadd.f32 %v1001_v43, %v858_v57  ;;  %v1118_v60 = vpop.permute.xlu0 %1117  ;;  %v822_v11 = vpop.permute.xlu2 %821 }
 0x14e   : > { %v855_v16 = vmul.f32 %v822_v11, %v3379_v24 }
 0x14f   : > { %v1050_v61 = vpack.c.bf16 %v1034_v59, %v1034_v59 }
 0x151   : > { %1067 = vst.msk [vmem:[#allocation2 + $0x38] sm:$0xf] %vm1052_vm0, %v1050_v61  ;;  %1333 = vmatmul.bf16.gmra.mxu0 %v2514_v4 }
 0x152   : > { %1164 = vst.msk [vmem:[#allocation2 + $0x38] sm:$0xf] %vm1149_vm1, %v1130_v63 }
 0x153   : > { %1181 = vst.msk [vmem:[#allocation2 + $0x38] sm:$0xf] %vm1166_vm2, %v2786_v0 }
 0x154   : > { %v817_v5 = vpop.permute.xlu1 %816 }
 0x155   : > { %v989_v20 = vpop.permute.xlu0 %988  ;;  %v854_v24 = vmul.f32 %v817_v5, %v3395_v29  ;;  %v1122_v30 = vpop.permute.xlu2 %1121 }
 0x156   : > { %v1028_v22 = vadd.f32 %v989_v20, %v852_v62 }
 0x158   : > { %v1044_v27 = vpack.c.bf16 %v1028_v22, %v1028_v22 }
 0x15a   : > { %1061 = vst.msk [vmem:[#allocation2 + $0x20] sm:$0xf] %vm1052_vm0, %v1044_v27 }
 0x15b   : > { %1158 = vst.msk [vmem:[#allocation2 + $0x20] sm:$0xf] %vm1149_vm1, %v1118_v60 }
 0x15c   : > { %1175 = vst.msk [vmem:[#allocation2 + $0x20] sm:$0xf] %vm1166_vm2, %v2786_v0  ;;  %v995_v1 = vpop.permute.xlu1 %994 }
 0x15d   : > { %v1031_v31 = vadd.f32 %v995_v1, %v855_v16  ;;  %v1132_v35 = vpop.permute.xlu0 %1131 }
 0x15e   : > { %1165 = vst.msk [vmem:[#allocation2 + $0x3c] sm:$0xf] %vm1149_vm1, %v1132_v35 }
 0x15f   : > { %v1047_v55 = vpack.c.bf16 %v1031_v31, %v1031_v31  ;;  %1182 = vst.msk [vmem:[#allocation2 + $0x3c] sm:$0xf] %vm1166_vm2, %v2786_v0 }
 0x161   : > { %1064 = vst.msk [vmem:[#allocation2 + $0x2c] sm:$0xf] %vm1052_vm0, %v1047_v55  ;;  %1338 = vmatmul.bf16.gmra.mxu0 %v2515_v52 }
 0x163   : > { %v2516_v19 = vld [vmem:[#allocation2 + $0x20] sm:$0xff] }
 0x165   : > { %v993_v36 = vpop.permute.xlu0 %992 }
 0x166   : > { %v1030_v49 = vadd.f32 %v993_v36, %v854_v24  ;;  %v2519_v7 = vld [vmem:[#allocation2 + $0x38] sm:$0xff] }
 0x167   : > { %1358 = vmatmul.bf16.gmra.mxu3 %v2519_v7 }
 0x168   : > { %v1046_v13 = vpack.c.bf16 %v1030_v49, %v1030_v49 }
 0x16a   : > { %1063 = vst.msk [vmem:[#allocation2 + $0x28] sm:$0xf] %vm1052_vm0, %v1046_v13 }
 0x16b   : > { %1160 = vst.msk [vmem:[#allocation2 + $0x28] sm:$0xf] %vm1149_vm1, %v1122_v30 }
 0x16c   : > { %1177 = vst.msk [vmem:[#allocation2 + $0x28] sm:$0xf] %vm1166_vm2, %v2786_v0 }
 0x16d   : > { %v1124_v34 = vpop.permute.xlu0 %1123 }
 0x16e   : > { %1161 = vst.msk [vmem:[#allocation2 + $0x2c] sm:$0xf] %vm1149_vm1, %v1124_v34 }
 0x16f   : > { %1178 = vst.msk [vmem:[#allocation2 + $0x2c] sm:$0xf] %vm1166_vm2, %v2786_v0  ;;  %v2532_v0 = vld [vmem:[%s4141_s4 + $0x20] sm:$0xff] }
 0x170   : > { %1763 = vmatpush.bf16.msra.mxu1 %v2532_v0  ;;  %2555 = vmatpush.bf16.msrb.mxu3 %v2532_v0 }
 0x171   : > { %1343 = vmatmul.bf16.gmra.mxu0 %v2516_v19 }
 0x174   : > { %1764 = vmatpush.bf16.msra.mxu1 %v2531_v23  ;;  %2556 = vmatpush.bf16.msrb.mxu3 %v2531_v23 }
 0x176   : > { %v2517_v29 = vld [vmem:[#allocation2 + $0x28] sm:$0xff] }
 0x178   : > { %1765 = vmatpush.bf16.msra.mxu1 %v2530_v38  ;;  %2557 = vmatpush.bf16.msrb.mxu3 %v2530_v38 }
 0x17c   : > { %1766 = vmatpush.bf16.msra.mxu1 %v2529_v10  ;;  %2558 = vmatpush.bf16.msrb.mxu3 %v2529_v10 }
 0x180   : > { %1767 = vmatpush.bf16.msra.mxu1 %v2528_v53  ;;  %2559 = vmatpush.bf16.msrb.mxu3 %v2528_v53 }
 0x181   : > { %1348 = vmatmul.bf16.gmra.mxu0 %v2517_v29 }
 0x1ae   : > { %v1324_v2 = vpop.f32.mrf.mxu0 }
 0x1af   : > { %v3550_v39 = vadd.f32 %v3544_v56, %v1324_v2 }
 0x1b1   : > { %v2414_v26 = vmul.f32 -1.442695, %v3550_v39 }
 0x1b3   : > { %2648 = vpow2.f32 %v2414_v26 }
 0x1b6   : > { %v1326_v32 = vpop.f32.mrf.mxu0 }
 0x1b7   : > { %v3557_v37 = vadd.f32 %v3544_v56, %v1326_v32 }
 0x1b9   : > { %v2649_v58 = vpop.eup %2648  ;;  %v2415_v51 = vmul.f32 -1.442695, %v3557_v37 }
 0x1ba   : > { %v1412_v47 = vadd.f32 1.0, %v2649_v58 }
 0x1bb   : > { %2650 = vpow2.f32 %v2415_v51 }
 0x1bc   : > { %2652 = vrcp.f32 %v1412_v47  ;;  %v1437_v43 = vand.u32 2147483647, %v1412_v47  ;;  %v1439_v59 = vand.u32 2147483648, %v1412_v47  ;;  %vm1433_vm4 = vweird.f32 %v1412_v47 }
 0x1be   : > { %v1329_v40 = vpop.f32.mrf.mxu0  ;;  %vm1438_vm7 = vcmp.eq.f32.partialorder %v1437_v43, 8.507059e+37  ;;  %v1440_v1 = vor.u32 1.1754944e-38, %v1439_v59 }
 0x1bf   : > { %v3564_v44 = vadd.f32 %v3544_v56, %v1329_v40 }
 0x1c1   : > { %v2651_v41 = vpop.eup %2650  ;;  %v2416_v18 = vmul.f32 -1.442695, %v3564_v44 }
 0x1c2   : > { %v2653_v42 = vpop.eup %2652  ;;  %v1413_v46 = vadd.f32 1.0, %v2651_v41 }
 0x1c3   : > { %v1429_v21 = vmul.f32 %v2653_v42, %v1412_v47  ;;  %2654 = vpow2.f32 %v2416_v18  ;;  %vm1434_vm3 = vweird.f32 %v2653_v42 }
 0x1c4   : > { %2656 = vrcp.f32 %v1413_v46  ;;  %v1452_v63 = vand.u32 2147483647, %v1413_v46  ;;  %v1454_v4 = vand.u32 2147483648, %v1413_v46  ;;  %vm3578_vm5 = vmor %vm1433_vm4, %vm1434_vm3  ;;  %vm1448_vm8 = vweird.f32 %v1413_v46 }
 0x1c5   : > { %v1430_v33 = vsub.f32 1.0, %v1429_v21 }
 0x1c6   : > { %v1331_v8 = vpop.f32.mrf.mxu0  ;;  %vm1453_vm10 = vcmp.eq.f32.partialorder %v1452_v63, 8.507059e+37  ;;  %v1455_v55 = vor.u32 1.1754944e-38, %v1454_v4 }
 0x1c7   : > { %v3568_v50 = vadd.f32 %v3544_v56, %v1331_v8  ;;  %v1354_v17 = vpop.f32.mrf.mxu3  ;;  %v1431_v14 = vmul.f32 %v2653_v42, %v1430_v33 }
 0x1c8   : > { %v3571_v28 = vadd.f32 %v3544_v56, %v1354_v17 }
 0x1c9   : > { %v2655_v48 = vpop.eup %2654  ;;  %v2417_v12 = vmul.f32 -1.442695, %v3568_v50  ;;  %v1432_v57 = vadd.f32 %v2653_v42, %v1431_v14 }
 0x1ca   : > { %v2657_v6 = vpop.eup %2656  ;;  %v3574_v54 = vadd.f32 1.0, %v2655_v48  ;;  %v2426_v45 = vmul.f32 -1.442695, %v3571_v28 }
 0x1cb   : > { %v1444_v25 = vmul.f32 %v2657_v6, %v1413_v46  ;;  %2658 = vpow2.f32 %v2417_v12  ;;  %vm1449_vm6 = vweird.f32 %v2657_v6  ;;  %v1436_v11 = vsel %vm3578_vm5, %v2653_v42, %v1432_v57 }
 0x1cc   : > { %2660 = vrcp.f32 %v3574_v54  ;;  %vm1450_vm9 = vmor %vm1448_vm8, %vm1449_vm6  ;;  %v1441_v7 = vsel %vm1438_vm7, %v1440_v1, %v1436_v11  ;;  %vm1463_vm11 = vweird.f32 %v3574_v54  ;;  %v1469_v41 = vand.u32 2147483648, %v3574_v54 }
 0x1cd   : > { %v1445_v60 = vsub.f32 1.0, %v1444_v25  ;;  %2662 = vpow2.f32 %v2426_v45  ;;  %v1668_v15 = vmul.f32 %v1441_v7, %v3550_v39  ;;  %v1467_v39 = vand.u32 2147483647, %v3574_v54 }
 0x1ce   : > { %v1334_v61 = vpop.f32.mrf.mxu0  ;;  %v1470_v45 = vor.u32 1.1754944e-38, %v1469_v41 }
 0x1cf   : > { %v1446_v5 = vmul.f32 %v2657_v6, %v1445_v60  ;;  %v3583_v20 = vadd.f32 %v3544_v56, %v1334_v61  ;;  %v1356_v22 = vpop.f32.mrf.mxu3  ;;  %vm1468_vm15 = vcmp.eq.f32.partialorder %v1467_v39, 8.507059e+37 }
 0x1d0   : > { %v3588_v27 = vadd.f32 %v3544_v56, %v1356_v22 }
 0x1d1   : > { %v2659_v16 = vpop.eup %2658  ;;  %v1447_v31 = vadd.f32 %v2657_v6, %v1446_v5  ;;  %v2418_v35 = vmul.f32 -1.442695, %v3583_v20 }
 0x1d2   : > { %v3591_v52 = vpop.eup %2660  ;;  %v1415_v24 = vadd.f32 1.0, %v2659_v16  ;;  %v2427_v36 = vmul.f32 -1.442695, %v3588_v27 }
 0x1d3   : > { %v2663_v49 = vpop.eup %2662  ;;  %v1451_v13 = vsel %vm1450_vm9, %v2657_v6, %v1447_v31  ;;  %v1459_v30 = vmul.f32 %v3591_v52, %v3574_v54  ;;  %2664 = vpow2.f32 %v2418_v35  ;;  %vm1464_vm12 = vweird.f32 %v3591_v52 }
 0x1d4   : > { %v1456_v34 = vsel %vm1453_vm10, %v1455_v55, %v1451_v13  ;;  %2666 = vrcp.f32 %v1415_v24  ;;  %v3597_v3 = vadd.f32 1.0, %v2663_v49  ;;  %v1484_v18 = vand.u32 2147483648, %v1415_v24  ;;  %vm3623_vm14 = vmor %vm1463_vm11, %vm1464_vm12 }
 0x1d5   : > { %v1669_v19 = vmul.f32 %v1456_v34, %v3557_v37  ;;  %v1460_v29 = vsub.f32 1.0, %v1459_v30  ;;  %2668 = vpow2.f32 %v2427_v36  ;;  %v1482_v33 = vand.u32 2147483647, %v1415_v24 }
 0x1d6   : > { %v1336_v9 = vpop.f32.mrf.mxu0  ;;  %2670 = vrcp.f32 %v3597_v3  ;;  %vm1478_vm0 = vweird.f32 %v1415_v24  ;;  %v1485_v54 = vor.u32 1.1754944e-38, %v1484_v18  ;;  %vm1613_vm3 = vweird.f32 %v3597_v3 }
 0x1d7   : > { %v3602_v0 = vadd.f32 %v3544_v56, %v1336_v9  ;;  %v1684_v23 = vpack.c.bf16 %v1669_v19, %v1668_v15  ;;  %v1461_v2 = vmul.f32 %v3591_v52, %v1460_v29  ;;  %vm1483_vm2 = vcmp.eq.f32.partialorder %v1482_v33, 8.507059e+37 }
 0x1d8   : > { %v1619_v5 = vand.u32 2147483648, %v3597_v3  ;;  %v1617_v1 = vand.u32 2147483647, %v3597_v3 }
 0x1d9   : > { %v2665_v38 = vpop.eup %2664  ;;  %v2419_v32 = vmul.f32 -1.442695, %v3602_v0  ;;  %1768 = vmatmul.bf16.vlgmr.msra.gmra.mxu1 %v1684_v23  ;;  %v1462_v51 = vadd.f32 %v3591_v52, %v1461_v2 }
 0x1da   : > { %v2667_v26 = vpop.eup %2666  ;;  %v3605_v10 = vadd.f32 1.0, %v2665_v38  ;;  %v1620_v49 = vor.u32 1.1754944e-38, %v1619_v5  ;;  %vm1618_vm8 = vcmp.eq.f32.partialorder %v1617_v1, 8.507059e+37 }
 0x1db   : > { %v1474_v37 = vmul.f32 %v2667_v26, %v1415_v24  ;;  %v2669_v53 = vpop.eup %2668  ;;  %vm1479_vm13 = vweird.f32 %v2667_v26  ;;  %v1466_v48 = vsel %vm3623_vm14, %v3591_v52, %v1462_v51 }
 0x1dc   : > { %2672 = vrcp.f32 %v3605_v10  ;;  %v3611_v58 = vpop.eup %2670  ;;  %v3615_v40 = vadd.f32 1.0, %v2669_v53  ;;  %vm1480_vm1 = vmor %vm1478_vm0, %vm1479_vm13  ;;  %v1471_v63 = vsel %vm1468_vm15, %v1470_v45, %v1466_v48  ;;  %vm1493_vm12 = vweird.f32 %v3605_v10 }
 0x1dd   : > { %v1475_v47 = vsub.f32 1.0, %v1474_v37  ;;  %v1609_v42 = vmul.f32 %v3611_v58, %v3597_v3  ;;  %2674 = vpow2.f32 %v2419_v32  ;;  %vm1614_vm4 = vweird.f32 %v3611_v58 }
 0x1de   : > { %v1339_v46 = vpop.f32.mrf.mxu0  ;;  %2676 = vrcp.f32 %v3615_v40  ;;  %v1670_v52 = vmul.f32 %v1471_v63, %v3564_v44  ;;  %vm3651_vm5 = vmor %vm1613_vm3, %vm1614_vm4  ;;  %vm1628_vm6 = vweird.f32 %v3615_v40  ;;  %v1632_v36 = vand.u32 2147483647, %v3615_v40 }
 0x1df   : > { %v1476_v21 = vmul.f32 %v2667_v26, %v1475_v47  ;;  %v1610_v17 = vsub.f32 1.0, %v1609_v42  ;;  %v3628_v14 = vadd.f32 %v3544_v56, %v1339_v46  ;;  %v1497_v53 = vand.u32 2147483647, %v3605_v10 }
 0x1e0   : > { %vm1633_vm10 = vcmp.eq.f32.partialorder %v1632_v36, 8.507059e+37  ;;  %v1499_v47 = vand.u32 2147483648, %v3605_v10 }
 0x1e1   : > { %v1477_v12 = vadd.f32 %v2667_v26, %v1476_v21  ;;  %v1611_v25 = vmul.f32 %v3611_v58, %v1610_v17  ;;  %v2420_v57 = vmul.f32 -1.442695, %v3628_v14  ;;  %vm1498_vm15 = vcmp.eq.f32.partialorder %v1497_v53, 8.507059e+37 }
 0x1e2   : > { %v3633_v6 = vpop.eup %2672 }
 0x1e3   : > { %v1481_v43 = vsel %vm1480_vm1, %v2667_v26, %v1477_v12  ;;  %v1489_v59 = vmul.f32 %v3633_v6, %v3605_v10  ;;  %v2675_v60 = vpop.eup %2674  ;;  %2678 = vpow2.f32 %v2420_v57  ;;  %v1612_v16 = vadd.f32 %v3611_v58, %v1611_v25 }
 0x1e4   : > { %v1486_v4 = vsel %vm1483_vm2, %v1485_v54, %v1481_v43  ;;  %v2677_v61 = vpop.eup %2676  ;;  %v3643_v11 = vadd.f32 1.0, %v2675_v60  ;;  %vm1494_vm11 = vweird.f32 %v3633_v6 }
 0x1e5   : > { %v1671_v62 = vmul.f32 %v1486_v4, %v3568_v50  ;;  %v1490_v22 = vsub.f32 1.0, %v1489_v59  ;;  %v1624_v31 = vmul.f32 %v2677_v61, %v3615_v40  ;;  %v1634_v50 = vand.u32 2147483648, %v3615_v40  ;;  %vm3689_vm13 = vmor %vm1493_vm12, %vm1494_vm11 }
 0x1e6   : > { %v1341_v35 = vpop.f32.mrf.mxu0  ;;  %2680 = vrcp.f32 %v3643_v11  ;;  %vm1629_vm7 = vweird.f32 %v2677_v61  ;;  %v1616_v34 = vsel %vm3651_vm5, %v3611_v58, %v1612_v16  ;;  %v1512_v8 = vand.u32 2147483647, %v3643_v11 }
 0x1e7   : > { %v1625_v24 = vsub.f32 1.0, %v1624_v31  ;;  %v1491_v7 = vmul.f32 %v3633_v6, %v1490_v22  ;;  %v3661_v44 = vadd.f32 %v3544_v56, %v1341_v35  ;;  %v1685_v13 = vpack.c.bf16 %v1671_v62, %v1670_v52  ;;  %vm3666_vm9 = vmor %vm1628_vm6, %vm1629_vm7 }
 0x1e8   : > { %v1635_v15 = vor.u32 1.1754944e-38, %v1634_v50  ;;  %v1621_v32 = vsel %vm1618_vm8, %v1620_v49, %v1616_v34  ;;  %v1514_v17 = vand.u32 2147483648, %v3643_v11  ;;  %vm1508_vm0 = vweird.f32 %v3643_v11 }
 0x1e9   : > { %v2679_v30 = vpop.eup %2678  ;;  %v1626_v19 = vmul.f32 %v2677_v61, %v1625_v24  ;;  %v2421_v23 = vmul.f32 -1.442695, %v3661_v44  ;;  %1773 = vmatmul.bf16.gmra.mxu1 %v1685_v13  ;;  %v1492_v37 = vadd.f32 %v3633_v6, %v1491_v7  ;;  %v1680_v18 = vmul.f32 %v1621_v32, %v3571_v28 }
 0x1ea   : > { %v1359_v29 = vpop.f32.mrf.mxu3  ;;  %v3670_v9 = vadd.f32 1.0, %v2679_v30  ;;  %v1515_v60 = vor.u32 1.1754944e-38, %v1514_v17  ;;  %vm1513_vm2 = vcmp.eq.f32.partialorder %v1512_v8, 8.507059e+37 }
 0x1eb   : > { %v1627_v38 = vadd.f32 %v2677_v61, %v1626_v19  ;;  %v3674_v2 = vadd.f32 %v3544_v56, %v1359_v29  ;;  %v1496_v10 = vsel %vm3689_vm13, %v3633_v6, %v1492_v37 }
 0x1ec   : > { %v2681_v26 = vpop.eup %2680  ;;  %2682 = vrcp.f32 %v3670_v9  ;;  %vm1523_vm4 = vweird.f32 %v3670_v9  ;;  %v1527_v19 = vand.u32 2147483647, %v3670_v9 }
 0x1ed   : > { %v1631_v39 = vsel %vm3666_vm9, %v2677_v61, %v1627_v38  ;;  %v1504_v58 = vmul.f32 %v2681_v26, %v3643_v11  ;;  %2684 = vpow2.f32 %v2421_v23  ;;  %v2428_v33 = vmul.f32 -1.442695, %v3674_v2 }
 0x1ee   : > { %v1344_v51 = vpop.f32.mrf.mxu0  ;;  %v1636_v40 = vsel %vm1633_vm10, %v1635_v15, %v1631_v39  ;;  %vm1509_vm14 = vweird.f32 %v2681_v26  ;;  %vm1528_vm7 = vcmp.eq.f32.partialorder %v1527_v19, 8.507059e+37 }
 0x1ef   : > { %v3686_v41 = vadd.f32 %v3544_v56, %v1344_v51  ;;  %v1681_v46 = vmul.f32 %v1636_v40, %v3588_v27  ;;  %v1505_v21 = vsub.f32 1.0, %v1504_v58  ;;  %2686 = vpow2.f32 %v2428_v33  ;;  %vm1510_vm1 = vmor %vm1508_vm0, %vm1509_vm14 }
 0x1f0   : > { %v1500_v27 = vor.u32 1.1754944e-38, %v1499_v47 }
 0x1f1   : > { %v2422_v48 = vmul.f32 -1.442695, %v3686_v41  ;;  %v1506_v28 = vmul.f32 %v2681_v26, %v1505_v21  ;;  %v1690_v45 = vpack.c.bf16 %v1681_v46, %v1680_v18 }
 0x1f2   : > { %v1361_v12 = vpop.f32.mrf.mxu3  ;;  %v3701_v54 = vpop.eup %2682  ;;  %v1501_v59 = vsel %vm1498_vm15, %v1500_v27, %v1496_v10 }
 0x1f3   : > { %2688 = vpow2.f32 %v2422_v48  ;;  %v3704_v25 = vadd.f32 %v3544_v56, %v1361_v12  ;;  %v1507_v6 = vadd.f32 %v2681_v26, %v1506_v28  ;;  %v1519_v57 = vmul.f32 %v3701_v54, %v3670_v9  ;;  %1798 = vmatmul.bf16.vlgmr.msrb.gmra.mxu3 %v1690_v45  ;;  %v2685_v43 = vpop.eup %2684 }
 0x1f4   : > { %v1419_v62 = vadd.f32 1.0, %v2685_v43  ;;  %v1672_v1 = vmul.f32 %v1501_v59, %v3583_v20  ;;  %v1529_v20 = vand.u32 2147483648, %v3670_v9  ;;  %vm1524_vm3 = vweird.f32 %v3701_v54 }
 0x1f5   : > { %v2429_v63 = vmul.f32 -1.442695, %v3704_v25  ;;  %v1511_v4 = vsel %vm1510_vm1, %v2681_v26, %v1507_v6  ;;  %v1520_v61 = vsub.f32 1.0, %v1519_v57  ;;  %v2687_v11 = vpop.eup %2686  ;;  %vm3734_vm5 = vmor %vm1523_vm4, %vm1524_vm3 }
 0x1f6   : > { %v1346_v5 = vpop.f32.mrf.mxu0  ;;  %v1516_v22 = vsel %vm1513_vm2, %v1515_v60, %v1511_v4  ;;  %v3716_v52 = vadd.f32 1.0, %v2687_v11  ;;  %v1530_v32 = vor.u32 1.1754944e-38, %v1529_v20  ;;  %v1544_v9 = vand.u32 2147483648, %v1419_v62  ;;  %v3824_v4 = vld [vmem:[%s4142_s5] ss:$0 sm:$0xff] }
 0x1f7   : > { %v3712_v16 = vadd.f32 %v3544_v56, %v1346_v5  ;;  %2690 = vpow2.f32 %v2429_v63  ;;  %v1673_v31 = vmul.f32 %v1516_v22, %v3602_v0  ;;  %v1521_v55 = vmul.f32 %v3701_v54, %v1520_v61 }
 0x1f8   : > { %2692 = vrcp.f32 %v1419_v62  ;;  %v1542_v39 = vand.u32 2147483647, %v1419_v62  ;;  %vm1538_vm8 = vweird.f32 %v1419_v62  ;;  %v1545_v33 = vor.u32 1.1754944e-38, %v1544_v9 }
 0x1f9   : > { %v2689_v35 = vpop.eup %2688  ;;  %v2423_v24 = vmul.f32 -1.442695, %v3712_v16  ;;  %v1686_v36 = vpack.c.bf16 %v1673_v31, %v1672_v1  ;;  %2694 = vrcp.f32 %v3716_v52  ;;  %v1522_v7 = vadd.f32 %v3701_v54, %v1521_v55 }
 0x1fa   : > { %v3719_v50 = vadd.f32 1.0, %v2689_v35  ;;  %vm1543_vm10 = vcmp.eq.f32.partialorder %v1542_v39, 8.507059e+37  ;;  %vm1643_vm11 = vweird.f32 %v3716_v52  ;;  %v1649_v45 = vand.u32 2147483648, %v3716_v52 }
 0x1fb   : > { %1778 = vmatmul.bf16.gmra.mxu1 %v1686_v36  ;;  %v1526_v26 = vsel %vm3734_vm5, %v3701_v54, %v1522_v7  ;;  %v1647_v59 = vand.u32 2147483647, %v3716_v52 }
 0x1fc   : > { %2696 = vrcp.f32 %v3719_v50  ;;  %v1531_v18 = vsel %vm1528_vm7, %v1530_v32, %v1526_v26  ;;  %vm1553_vm13 = vweird.f32 %v3719_v50  ;;  %v1650_v61 = vor.u32 1.1754944e-38, %v1649_v45 }
 0x1fd   : > { %v2691_v49 = vpop.eup %2690  ;;  %2698 = vpow2.f32 %v2423_v24  ;;  %v1674_v28 = vmul.f32 %v1531_v18, %v3628_v14  ;;  %v1559_v14 = vand.u32 2147483648, %v3719_v50  ;;  %vm1648_vm1 = vcmp.eq.f32.partialorder %v1647_v59, 8.507059e+37 }
 0x1fe   : > { %v2693_v0 = vpop.eup %2692  ;;  %v3727_v13 = vadd.f32 1.0, %v2691_v49  ;;  %v1349_v30 = vpop.f32.mrf.mxu0  ;;  %v1557_v24 = vand.u32 2147483647, %v3719_v50 }
 0x1ff   : > { %v1534_v34 = vmul.f32 %v2693_v0, %v1419_v62  ;;  %v3732_v29 = vpop.eup %2694  ;;  %v3739_v23 = vadd.f32 %v3544_v56, %v1349_v30  ;;  %vm1539_vm6 = vweird.f32 %v2693_v0  ;;  %v1560_v3 = vor.u32 1.1754944e-38, %v1559_v14 }
 0x200   : > { %2700 = vrcp.f32 %v3727_v13  ;;  %v1639_v37 = vmul.f32 %v3732_v29, %v3716_v52  ;;  %vm1540_vm9 = vmor %vm1538_vm8, %vm1539_vm6  ;;  %vm1644_vm12 = vweird.f32 %v3732_v29  ;;  %v1662_v62 = vand.u32 2147483647, %v3727_v13 }
 0x201   : > { %v1535_v15 = vsub.f32 1.0, %v1534_v34  ;;  %v2424_v40 = vmul.f32 -1.442695, %v3739_v23  ;;  %vm3769_vm14 = vmor %vm1643_vm11, %vm1644_vm12  ;;  %v1664_v5 = vand.u32 2147483648, %v3727_v13  ;;  %vm1658_vm2 = vweird.f32 %v3727_v13 }
 0x202   : > { %v3741_v38 = vpop.eup %2696  ;;  %v1640_v47 = vsub.f32 1.0, %v1639_v37  ;;  %vm1663_vm5 = vcmp.eq.f32.partialorder %v1662_v62, 8.507059e+37  ;;  %vm1558_vm7 = vcmp.eq.f32.partialorder %v1557_v24, 8.507059e+37 }
 0x203   : > { %v1536_v53 = vmul.f32 %v2693_v0, %v1535_v15  ;;  %v1549_v58 = vmul.f32 %v3741_v38, %v3719_v50  ;;  %v2699_v51 = vpop.eup %2698  ;;  %2702 = vpow2.f32 %v2424_v40  ;;  %vm1554_vm0 = vweird.f32 %v3741_v38 }
 0x204   : > { %v3751_v46 = vadd.f32 1.0, %v2699_v51  ;;  %v1641_v8 = vmul.f32 %v3732_v29, %v1640_v47  ;;  %v1665_v20 = vor.u32 1.1754944e-38, %v1664_v5  ;;  %vm3789_vm4 = vmor %vm1553_vm13, %vm1554_vm0 }
 0x205   : > { %v1537_v42 = vadd.f32 %v2693_v0, %v1536_v53  ;;  %v1550_v10 = vsub.f32 1.0, %v1549_v58 }
 0x206   : > { %v2701_v21 = vpop.eup %2700  ;;  %2704 = vrcp.f32 %v3751_v46  ;;  %v1351_v48 = vpop.f32.mrf.mxu0  ;;  %v1642_v27 = vadd.f32 %v3732_v29, %v1641_v8  ;;  %v1572_v7 = vand.u32 2147483647, %v3751_v46  ;;  %v1574_v30 = vand.u32 2147483648, %v3751_v46 }
 0x207   : > { %v1541_v17 = vsel %vm1540_vm9, %v2693_v0, %v1537_v42  ;;  %v1654_v6 = vmul.f32 %v2701_v21, %v3727_v13  ;;  %v1551_v57 = vmul.f32 %v3741_v38, %v1550_v10  ;;  %v3765_v43 = vadd.f32 %v3544_v56, %v1351_v48 }
 0x208   : > { %v1546_v12 = vsel %vm1543_vm10, %v1545_v33, %v1541_v17  ;;  %v1646_v11 = vsel %vm3769_vm14, %v3732_v29, %v1642_v27  ;;  %vm1659_vm15 = vweird.f32 %v2701_v21  ;;  %vm1568_vm8 = vweird.f32 %v3751_v46 }
 0x209   : > { %v1675_v54 = vmul.f32 %v1546_v12, %v3661_v44  ;;  %v1655_v60 = vsub.f32 1.0, %v1654_v6  ;;  %v2703_v44 = vpop.eup %2702  ;;  %v2425_v22 = vmul.f32 -1.442695, %v3765_v43  ;;  %v1552_v35 = vadd.f32 %v3741_v38, %v1551_v57  ;;  %vm1660_vm3 = vmor %vm1658_vm2, %vm1659_vm15 }
 0x20a   : > { %v3779_v31 = vadd.f32 1.0, %v2703_v44  ;;  %v1651_v36 = vsel %vm1648_vm1, %v1650_v61, %v1646_v11  ;;  %v1575_v53 = vor.u32 1.1754944e-38, %v1574_v30  ;;  %vm1573_vm10 = vcmp.eq.f32.partialorder %v1572_v7, 8.507059e+37  ;;  %v2542_v44 = vld [vmem:[%s4143_s6 + $0x30] sm:$0xff]  ;;  %v2539_v61 = vld [vmem:[%s4143_s6 + $0x18] sm:$0xff]  ;;  %v2537_v11 = vld [vmem:[%s4143_s6 + $0x8] sm:$0xff] }
 0x20b   : > { %v1687_v63 = vpack.c.bf16 %v1675_v54, %v1674_v28  ;;  %v1656_v1 = vmul.f32 %v2701_v21, %v1655_v60  ;;  %2706 = vpow2.f32 %v2425_v22  ;;  %v1556_v13 = vsel %vm3789_vm4, %v3741_v38, %v1552_v35  ;;  %v2538_v22 = vld [vmem:[%s4143_s6 + $0x10] sm:$0xff]  ;;  %v2536_v35 = vld [vmem:[%s4143_s6] sm:$0xff] }
 0x20c   : > { %v2705_v56 = vpop.eup %2704  ;;  %2708 = vrcp.f32 %v3779_v31  ;;  %v1682_v50 = vmul.f32 %v1651_v36, %v3674_v2  ;;  %v1561_v37 = vsel %vm1558_vm7, %v1560_v3, %v1556_v13  ;;  %v1589_v10 = vand.u32 2147483648, %v3779_v31 }
 0x20d   : > { %1783 = vmatmul.bf16.gmra.mxu1 %v1687_v63  ;;  %v1564_v52 = vmul.f32 %v2705_v56, %v3751_v46  ;;  %v1657_v55 = vadd.f32 %v2701_v21, %v1656_v1  ;;  %vm1569_vm6 = vweird.f32 %v2705_v56  ;;  %v1676_v2 = vmul.f32 %v1561_v37, %v3686_v41  ;;  %v2543_v63 = vld [vmem:[%s4143_s6 + $0x38] sm:$0xff] }
 0x20e   : > { %vm1570_vm9 = vmor %vm1568_vm8, %vm1569_vm6  ;;  %vm1583_vm12 = vweird.f32 %v3779_v31  ;;  %v1587_v8 = vand.u32 2147483647, %v3779_v31  ;;  %v1590_v12 = vor.u32 1.1754944e-38, %v1589_v10  ;;  %2205 = vmatpush.bf16.msra.mxu2 %v2543_v63  ;;  %2560 = vmatpush.bf16.msra.mxu3 %v2543_v63 }
 0x20f   : > { %v1565_v49 = vsub.f32 1.0, %v1564_v52  ;;  %v1661_v34 = vsel %vm1660_vm3, %v2701_v21, %v1657_v55 }
 0x210   : > { %v1666_v29 = vsel %vm1663_vm5, %v1665_v20, %v1661_v34  ;;  %vm1588_vm15 = vcmp.eq.f32.partialorder %v1587_v8, 8.507059e+37 }
 0x211   : > { %v1566_v19 = vmul.f32 %v2705_v56, %v1565_v49  ;;  %v1683_v15 = vmul.f32 %v1666_v29, %v3704_v25  ;;  %v2707_v26 = vpop.eup %2706 }
 0x212   : > { %v2709_v9 = vpop.eup %2708  ;;  %v1423_v39 = vadd.f32 1.0, %v2707_v26  ;;  %2206 = vmatpush.bf16.msra.mxu2 %v2542_v44  ;;  %2561 = vmatpush.bf16.msra.mxu3 %v2542_v44 }
 0x213   : > { %v1567_v32 = vadd.f32 %v2705_v56, %v1566_v19  ;;  %v1691_v58 = vpack.c.bf16 %v1683_v15, %v1682_v50  ;;  %v1579_v51 = vmul.f32 %v2709_v9, %v3779_v31  ;;  %vm1584_vm11 = vweird.f32 %v2709_v9 }
 0x214   : > { %2710 = vrcp.f32 %v1423_v39  ;;  %vm1585_vm13 = vmor %vm1583_vm12, %vm1584_vm11  ;;  %v1604_v48 = vand.u32 2147483648, %v1423_v39  ;;  %vm1598_vm0 = vweird.f32 %v1423_v39 }
 0x215   : > { %v1571_v38 = vsel %vm1570_vm9, %v2705_v56, %v1567_v32  ;;  %1803 = vmatmul.bf16.gmra.mxu3 %v1691_v58  ;;  %v1580_v40 = vsub.f32 1.0, %v1579_v51 }
 0x216   : > { %v1576_v47 = vsel %vm1573_vm10, %v1575_v53, %v1571_v38  ;;  %v1605_v27 = vor.u32 1.1754944e-38, %v1604_v48 }
 0x217   : > { %v1677_v25 = vmul.f32 %v1576_v47, %v3712_v16  ;;  %v1581_v18 = vmul.f32 %v2709_v9, %v1580_v40  ;;  %v1602_v16 = vand.u32 2147483647, %v1423_v39 }
 0x219   : > { %v1688_v42 = vpack.c.bf16 %v1677_v25, %v1676_v2  ;;  %v1582_v21 = vadd.f32 %v2709_v9, %v1581_v18  ;;  %vm1603_vm2 = vcmp.eq.f32.partialorder %v1602_v16, 8.507059e+37 }
 0x21a   : > { %v2711_v46 = vpop.eup %2710 }
 0x21b   : > { %v1594_v33 = vmul.f32 %v2711_v46, %v1423_v39  ;;  %v1586_v41 = vsel %vm1585_vm13, %v2709_v9, %v1582_v21  ;;  %vm1599_vm14 = vweird.f32 %v2711_v46 }
 0x21c   : > { %v1591_v54 = vsel %vm1588_vm15, %v1590_v12, %v1586_v41  ;;  %vm1600_vm1 = vmor %vm1598_vm0, %vm1599_vm14 }
 0x21d   : > { %1788 = vmatmul.bf16.gmra.mxu1 %v1688_v42  ;;  %v1595_v17 = vsub.f32 1.0, %v1594_v33  ;;  %v1678_v14 = vmul.f32 %v1591_v54, %v3739_v23  ;;  %v2541_v23 = vld [vmem:[%s4143_s6 + $0x28] sm:$0xff] }
 0x21e   : > { %2207 = vmatpush.bf16.msra.mxu2 %v2541_v23  ;;  %2562 = vmatpush.bf16.msra.mxu3 %v2541_v23 }
 0x21f   : > { %v1596_v28 = vmul.f32 %v2711_v46, %v1595_v17 }
 0x221   : > { %v1597_v45 = vadd.f32 %v2711_v46, %v1596_v28 }
 0x223   : > { %v1601_v6 = vsel %vm1600_vm1, %v2711_v46, %v1597_v45 }
 0x224   : > { %v1606_v57 = vsel %vm1603_vm2, %v1605_v27, %v1601_v6 }
 0x225   : > { %v1679_v59 = vmul.f32 %v1606_v57, %v3765_v43  ;;  %v2540_v43 = vld [vmem:[%s4143_s6 + $0x20] sm:$0xff] }
 0x226   : > { %2208 = vmatpush.bf16.msra.mxu2 %v2540_v43  ;;  %2563 = vmatpush.bf16.msra.mxu3 %v2540_v43 }
 0x227   : > { %v1689_v60 = vpack.c.bf16 %v1679_v59, %v1678_v14 }
 0x22a   : > { %2209 = vmatpush.bf16.msra.mxu2 %v2539_v61  ;;  %2564 = vmatpush.bf16.msra.mxu3 %v2539_v61 }
 0x22d   : > { %1793 = vmatmul.bf16.gmra.mxu1 %v1689_v60 }
 0x22e   : > { %2210 = vmatpush.bf16.msra.mxu2 %v2538_v22  ;;  %2565 = vmatpush.bf16.msra.mxu3 %v2538_v22 }
 0x232   : > { %2211 = vmatpush.bf16.msra.mxu2 %v2537_v11  ;;  %2566 = vmatpush.bf16.msra.mxu3 %v2537_v11 }
 0x236   : > { %2212 = vmatpush.bf16.msra.mxu2 %v2536_v35  ;;  %2567 = vmatpush.bf16.msra.mxu3 %v2536_v35 }
 0x256   : > { %v1769_v62 = vpop.f32.mrf.mxu1 }
 0x257   : > { %v3830_v5 = vadd.f32 %v3824_v4, %v1769_v62 }
 0x259   : > { %v2462_v56 = vmul.f32 -1.442695, %v3830_v5 }
 0x25b   : > { %2712 = vpow2.f32 %v2462_v56 }
 0x25e   : > { %v1771_v1 = vpop.f32.mrf.mxu1 }
 0x25f   : > { %v1772_v31 = vadd.f32 %v3824_v4, %v1771_v1 }
 0x261   : > { %v2713_v52 = vpop.eup %2712  ;;  %v2463_v55 = vmul.f32 -1.442695, %v1772_v31 }
 0x262   : > { %v1857_v24 = vadd.f32 1.0, %v2713_v52 }
 0x263   : > { %2714 = vpow2.f32 %v2463_v55 }
 0x264   : > { %2716 = vrcp.f32 %v1857_v24  ;;  %v1882_v37 = vand.u32 2147483647, %v1857_v24  ;;  %v1884_v53 = vand.u32 2147483648, %v1857_v24  ;;  %vm1878_vm4 = vweird.f32 %v1857_v24 }
 0x266   : > { %v1774_v36 = vpop.f32.mrf.mxu1  ;;  %vm1883_vm7 = vcmp.eq.f32.partialorder %v1882_v37, 8.507059e+37  ;;  %v1885_v42 = vor.u32 1.1754944e-38, %v1884_v53 }
 0x267   : > { %v3844_v49 = vadd.f32 %v3824_v4, %v1774_v36 }
 0x269   : > { %v2715_v20 = vpop.eup %2714  ;;  %v2464_v30 = vmul.f32 -1.442695, %v3844_v49 }
 0x26a   : > { %v2717_v0 = vpop.eup %2716  ;;  %v1858_v7 = vadd.f32 1.0, %v2715_v20 }
 0x26b   : > { %v1874_v34 = vmul.f32 %v2717_v0, %v1857_v24  ;;  %vm1879_vm3 = vweird.f32 %v2717_v0 }
 0x26c   : > { %2718 = vrcp.f32 %v1858_v7  ;;  %vm3853_vm5 = vmor %vm1878_vm4, %vm1879_vm3  ;;  %v1897_v51 = vand.u32 2147483647, %v1858_v7  ;;  %v1899_v47 = vand.u32 2147483648, %v1858_v7  ;;  %vm1893_vm8 = vweird.f32 %v1858_v7 }
 0x26d   : > { %v1875_v13 = vsub.f32 1.0, %v1874_v34  ;;  %2720 = vpow2.f32 %v2464_v30 }
 0x26e   : > { %v1776_v29 = vpop.f32.mrf.mxu1  ;;  %vm1898_vm10 = vcmp.eq.f32.partialorder %v1897_v51, 8.507059e+37  ;;  %v1900_v48 = vor.u32 1.1754944e-38, %v1899_v47 }
 0x26f   : > { %v1876_v19 = vmul.f32 %v2717_v0, %v1875_v13  ;;  %v3848_v3 = vadd.f32 %v3824_v4, %v1776_v29 }
 0x271   : > { %v2465_v15 = vmul.f32 -1.442695, %v3848_v3  ;;  %v1877_v32 = vadd.f32 %v2717_v0, %v1876_v19 }
 0x272   : > { %v2719_v50 = vpop.eup %2718 }
 0x273   : > { %v2721_v26 = vpop.eup %2720  ;;  %v1889_v9 = vmul.f32 %v2719_v50, %v1858_v7  ;;  %2722 = vpow2.f32 %v2465_v15  ;;  %v1881_v25 = vsel %vm3853_vm5, %v2717_v0, %v1877_v32  ;;  %vm1894_vm6 = vweird.f32 %v2719_v50 }
 0x274   : > { %v3851_v39 = vadd.f32 1.0, %v2721_v26  ;;  %v1886_v17 = vsel %vm1883_vm7, %v1885_v42, %v1881_v25  ;;  %vm1895_vm9 = vmor %vm1893_vm8, %vm1894_vm6 }
 0x275   : > { %v1890_v58 = vsub.f32 1.0, %v1889_v9  ;;  %v2113_v54 = vmul.f32 %v1886_v17, %v3830_v5 }
 0x276   : > { %2724 = vrcp.f32 %v3851_v39  ;;  %v1799_v2 = vpop.f32.mrf.mxu3  ;;  %vm1908_vm12 = vweird.f32 %v3851_v39  ;;  %v1914_v35 = vand.u32 2147483648, %v3851_v39  ;;  %v1912_v55 = vand.u32 2147483647, %v3851_v39 }
 0x277   : > { %v1891_v40 = vmul.f32 %v2719_v50, %v1890_v58  ;;  %v3861_v18 = vadd.f32 %v3824_v4, %v1799_v2 }
 0x278   : > { %v1779_v46 = vpop.f32.mrf.mxu1  ;;  %v1915_v19 = vor.u32 1.1754944e-38, %v1914_v35  ;;  %vm1913_vm0 = vcmp.eq.f32.partialorder %v1912_v55, 8.507059e+37 }
 0x279   : > { %v1892_v21 = vadd.f32 %v2719_v50, %v1891_v40  ;;  %v3864_v33 = vadd.f32 %v3824_v4, %v1779_v46  ;;  %v2474_v10 = vmul.f32 -1.442695, %v3861_v18  ;;  %v2723_v8 = vpop.eup %2722 }
 0x27a   : > { %v1860_v28 = vadd.f32 1.0, %v2723_v8 }
 0x27b   : > { %v1896_v41 = vsel %vm1895_vm9, %v2719_v50, %v1892_v21  ;;  %v2466_v16 = vmul.f32 -1.442695, %v3864_v33  ;;  %2726 = vpow2.f32 %v2474_v10 }
 0x27c   : > { %v2725_v12 = vpop.eup %2724  ;;  %v1901_v45 = vsel %vm1898_vm10, %v1900_v48, %v1896_v41  ;;  %2728 = vrcp.f32 %v1860_v28  ;;  %v1927_v24 = vand.u32 2147483647, %v1860_v28  ;;  %v1929_v36 = vand.u32 2147483648, %v1860_v28 }
 0x27d   : > { %v2114_v27 = vmul.f32 %v1901_v45, %v1772_v31  ;;  %v1904_v6 = vmul.f32 %v2725_v12, %v3851_v39  ;;  %2730 = vpow2.f32 %v2466_v16  ;;  %vm1909_vm11 = vweird.f32 %v2725_v12 }
 0x27e   : > { %v1801_v57 = vpop.f32.mrf.mxu3  ;;  %vm3887_vm13 = vmor %vm1908_vm12, %vm1909_vm11  ;;  %vm1923_vm15 = vweird.f32 %v1860_v28  ;;  %vm1928_vm2 = vcmp.eq.f32.partialorder %v1927_v24, 8.507059e+37  ;;  %v1930_v15 = vor.u32 1.1754944e-38, %v1929_v36 }
 0x27f   : > { %v1905_v14 = vsub.f32 1.0, %v1904_v6  ;;  %v2129_v59 = vpack.c.bf16 %v2114_v27, %v2113_v54  ;;  %v3871_v60 = vadd.f32 %v3824_v4, %v1801_v57 }
 0x280   : > { %v1781_v63 = vpop.f32.mrf.mxu1 }
 0x281   : > { %v2727_v44 = vpop.eup %2726  ;;  %v1906_v23 = vmul.f32 %v2725_v12, %v1905_v14  ;;  %v3874_v43 = vadd.f32 %v3824_v4, %v1781_v63  ;;  %2213 = vmatmul.bf16.vlgmr.msra.gmra.mxu2 %v2129_v59  ;;  %v2475_v61 = vmul.f32 -1.442695, %v3871_v60 }
 0x282   : > { %v3877_v62 = vadd.f32 1.0, %v2727_v44  ;;  %v2729_v5 = vpop.eup %2728 }
 0x283   : > { %v2467_v22 = vmul.f32 -1.442695, %v3874_v43  ;;  %2732 = vpow2.f32 %v2475_v61  ;;  %v2731_v56 = vpop.eup %2730  ;;  %v1919_v11 = vmul.f32 %v2729_v5, %v1860_v28  ;;  %v1907_v1 = vadd.f32 %v2725_v12, %v1906_v23 }
 0x284   : > { %2734 = vrcp.f32 %v3877_v62  ;;  %v3881_v31 = vadd.f32 1.0, %v2731_v56  ;;  %vm1924_vm14 = vweird.f32 %v2729_v5  ;;  %v2062_v46 = vand.u32 2147483647, %v3877_v62 }
 0x285   : > { %v1920_v52 = vsub.f32 1.0, %v1919_v11  ;;  %2736 = vpow2.f32 %v2467_v22  ;;  %v1911_v30 = vsel %vm3887_vm13, %v2725_v12, %v1907_v1  ;;  %vm1925_vm1 = vmor %vm1923_vm15, %vm1924_vm14  ;;  %v2064_v21 = vand.u32 2147483648, %v3877_v62 }
 0x286   : > { %2738 = vrcp.f32 %v3881_v31  ;;  %v1916_v9 = vsel %vm1913_vm0, %v1915_v19, %v1911_v30  ;;  %v1942_v8 = vand.u32 2147483647, %v3881_v31  ;;  %vm1938_vm4 = vweird.f32 %v3881_v31 }
 0x287   : > { %v1921_v0 = vmul.f32 %v2729_v5, %v1920_v52  ;;  %v2115_v25 = vmul.f32 %v1916_v9, %v3844_v49  ;;  %vm2058_vm5 = vweird.f32 %v3877_v62  ;;  %vm3927_vm6 = vcmp.eq.f32.partialorder %v2062_v46, 8.507059e+37 }
 0x288   : > { %v2065_v54 = vor.u32 1.1754944e-38, %v2064_v21  ;;  %vm3933_vm7 = vcmp.eq.f32.partialorder %v1942_v8, 8.507059e+37 }
 0x289   : > { %v2733_v7 = vpop.eup %2732  ;;  %v1922_v29 = vadd.f32 %v2729_v5, %v1921_v0 }
 0x28a   : > { %v1784_v34 = vpop.f32.mrf.mxu1  ;;  %v3893_v13 = vpop.eup %2734  ;;  %v3895_v50 = vadd.f32 1.0, %v2733_v7 }
 0x28b   : > { %v2054_v26 = vmul.f32 %v3893_v13, %v3877_v62  ;;  %v2737_v32 = vpop.eup %2736  ;;  %v1926_v37 = vsel %vm1925_vm1, %v2729_v5, %v1922_v29  ;;  %v3901_v53 = vadd.f32 %v3824_v4, %v1784_v34  ;;  %vm2059_vm3 = vweird.f32 %v3893_v13 }
 0x28c   : > { %2740 = vrcp.f32 %v3895_v50  ;;  %v3903_v39 = vpop.eup %2738  ;;  %v1931_v58 = vsel %vm1928_vm2, %v1930_v15, %v1926_v37  ;;  %v3905_v51 = vadd.f32 1.0, %v2737_v32  ;;  %v2077_v27 = vand.u32 2147483647, %v3895_v50  ;;  %vm3939_vm8 = vmor %vm2058_vm5, %vm2059_vm3 }
 0x28d   : > { %v2055_v38 = vsub.f32 1.0, %v2054_v26  ;;  %v2116_v47 = vmul.f32 %v1931_v58, %v3848_v3  ;;  %v1934_v2 = vmul.f32 %v3903_v39, %v3881_v31  ;;  %v2468_v10 = vmul.f32 -1.442695, %v3901_v53 }
 0x28e   : > { %2742 = vrcp.f32 %v3905_v51  ;;  %v1944_v3 = vand.u32 2147483648, %v3881_v31  ;;  %v2079_v23 = vand.u32 2147483648, %v3895_v50  ;;  %vm1939_vm9 = vweird.f32 %v3903_v39 }
 0x28f   : > { %v2056_v40 = vmul.f32 %v3893_v13, %v2055_v38  ;;  %v1935_v42 = vsub.f32 1.0, %v1934_v2  ;;  %v2130_v48 = vpack.c.bf16 %v2116_v47, %v2115_v25  ;;  %2744 = vpow2.f32 %v2468_v10  ;;  %vm3959_vm13 = vmor %vm1938_vm4, %vm1939_vm9 }
 0x290   : > { %v1945_v59 = vor.u32 1.1754944e-38, %v1944_v3  ;;  %vm2073_vm10 = vweird.f32 %v3895_v50  ;;  %v1957_v1 = vand.u32 2147483647, %v3905_v51  ;;  %v1959_v35 = vand.u32 2147483648, %v3905_v51 }
 0x291   : > { %v2057_v49 = vadd.f32 %v3893_v13, %v2056_v40  ;;  %v1936_v16 = vmul.f32 %v3903_v39, %v1935_v42  ;;  %2218 = vmatmul.bf16.gmra.mxu2 %v2130_v48  ;;  %vm3953_vm12 = vcmp.eq.f32.partialorder %v2077_v27, 8.507059e+37  ;;  %v2080_v20 = vor.u32 1.1754944e-38, %v2079_v23 }
 0x292   : > { %v1786_v17 = vpop.f32.mrf.mxu1  ;;  %v2741_v41 = vpop.eup %2740  ;;  %vm1953_vm0 = vweird.f32 %v3905_v51  ;;  %v1960_v32 = vor.u32 1.1754944e-38, %v1959_v35  ;;  %vm1958_vm2 = vcmp.eq.f32.partialorder %v1957_v1, 8.507059e+37 }
 0x293   : > { %v3921_v28 = vadd.f32 %v3824_v4, %v1786_v17  ;;  %v2069_v12 = vmul.f32 %v2741_v41, %v3895_v50  ;;  %v2061_v61 = vsel %vm3939_vm8, %v3893_v13, %v2057_v49  ;;  %v1937_v5 = vadd.f32 %v3903_v39, %v1936_v16 }
 0x294   : > { %v2743_v57 = vpop.eup %2742  ;;  %vm2074_vm11 = vweird.f32 %v2741_v41  ;;  %v2066_v24 = vsel %vm3927_vm6, %v2065_v54, %v2061_v61 }
 0x295   : > { %v2469_v6 = vmul.f32 -1.442695, %v3921_v28  ;;  %v2070_v44 = vsub.f32 1.0, %v2069_v12  ;;  %v1949_v62 = vmul.f32 %v2743_v57, %v3905_v51  ;;  %v2745_v56 = vpop.eup %2744  ;;  %vm1954_vm14 = vweird.f32 %v2743_v57  ;;  %vm2075_vm15 = vmor %vm2073_vm10, %vm2074_vm11 }
 0x296   : > { %v3965_v0 = vadd.f32 1.0, %v2745_v56  ;;  %v1941_v19 = vsel %vm3959_vm13, %v3903_v39, %v1937_v5  ;;  %v2125_v37 = vmul.f32 %v2066_v24, %v3861_v18  ;;  %vm1955_vm1 = vmor %vm1953_vm0, %vm1954_vm14 }
 0x297   : > { %2746 = vpow2.f32 %v2469_v6  ;;  %v2071_v22 = vmul.f32 %v2741_v41, %v2070_v44  ;;  %v1950_v11 = vsub.f32 1.0, %v1949_v62  ;;  %v1946_v51 = vsel %vm3933_vm7, %v1945_v59, %v1941_v19 }
 0x298   : > { %v1804_v30 = vpop.f32.mrf.mxu3  ;;  %2748 = vrcp.f32 %v3965_v0  ;;  %v2117_v18 = vmul.f32 %v1946_v51, %v3864_v33  ;;  %v1974_v54 = vand.u32 2147483648, %v3965_v0  ;;  %vm1968_vm5 = vweird.f32 %v3965_v0 }
 0x299   : > { %v2072_v36 = vadd.f32 %v2741_v41, %v2071_v22  ;;  %v1951_v34 = vmul.f32 %v2743_v57, %v1950_v11  ;;  %v3974_v13 = vadd.f32 %v3824_v4, %v1804_v30  ;;  %v1972_v23 = vand.u32 2147483647, %v3965_v0 }
 0x29a   : > { %v1789_v7 = vpop.f32.mrf.mxu1  ;;  %v1975_v52 = vor.u32 1.1754944e-38, %v1974_v54 }
 0x29b   : > { %v3971_v31 = vadd.f32 %v3824_v4, %v1789_v7  ;;  %v2076_v29 = vsel %vm2075_vm15, %v2741_v41, %v2072_v36  ;;  %v1952_v26 = vadd.f32 %v2743_v57, %v1951_v34  ;;  %v2476_v39 = vmul.f32 -1.442695, %v3974_v13 }
 0x29c   : > { %v2081_v50 = vsel %vm3953_vm12, %v2080_v20, %v2076_v29  ;;  %vm1973_vm10 = vcmp.eq.f32.partialorder %v1972_v23, 8.507059e+37 }
 0x29d   : > { %v2747_v15 = vpop.eup %2746  ;;  %v2470_v9 = vmul.f32 -1.442695, %v3971_v31  ;;  %v2126_v58 = vmul.f32 %v2081_v50, %v3871_v60  ;;  %v1956_v47 = vsel %vm1955_vm1, %v2743_v57, %v1952_v26 }
 0x29e   : > { %v1864_v38 = vadd.f32 1.0, %v2747_v15  ;;  %v1961_v2 = vsel %vm1958_vm2, %v1960_v32, %v1956_v47  ;;  %v2749_v42 = vpop.eup %2748 }
 0x29f   : > { %2750 = vpow2.f32 %v2470_v9  ;;  %v2135_v25 = vpack.c.bf16 %v2126_v58, %v2125_v37  ;;  %v2118_v40 = vmul.f32 %v1961_v2, %v3874_v43  ;;  %v1964_v21 = vmul.f32 %v2749_v42, %v3965_v0 }
 0x2a0   : > { %2752 = vrcp.f32 %v1864_v38  ;;  %v1806_v60 = vpop.f32.mrf.mxu3  ;;  %vm1969_vm3 = vweird.f32 %v2749_v42  ;;  %v1989_v14 = vand.u32 2147483648, %v1864_v38  ;;  %v1987_v44 = vand.u32 2147483647, %v1864_v38 }
 0x2a1   : > { %2754 = vpow2.f32 %v2476_v39  ;;  %2243 = vmatmul.bf16.vlgmr.msra.gmra.mxu3 %v2135_v25  ;;  %v2131_v8 = vpack.c.bf16 %v2118_v40, %v2117_v18  ;;  %v3996_v3 = vadd.f32 %v3824_v4, %v1806_v60  ;;  %v1965_v48 = vsub.f32 1.0, %v1964_v21  ;;  %vm4012_vm6 = vmor %vm1968_vm5, %vm1969_vm3 }
 0x2a2   : > { %v1791_v46 = vpop.f32.mrf.mxu1  ;;  %vm1983_vm7 = vweird.f32 %v1864_v38  ;;  %v1990_v11 = vor.u32 1.1754944e-38, %v1989_v14  ;;  %vm1988_vm9 = vcmp.eq.f32.partialorder %v1987_v44, 8.507059e+37 }
 0x2a3   : > { %v3993_v10 = vadd.f32 %v3824_v4, %v1791_v46  ;;  %2223 = vmatmul.bf16.gmra.mxu2 %v2131_v8  ;;  %v2477_v33 = vmul.f32 -1.442695, %v3996_v3  ;;  %v1966_v12 = vmul.f32 %v2749_v42, %v1965_v48 }
 0x2a5   : > { %v2751_v17 = vpop.eup %2750  ;;  %v2471_v49 = vmul.f32 -1.442695, %v3993_v10  ;;  %v1967_v57 = vadd.f32 %v2749_v42, %v1966_v12 }
 0x2a6   : > { %v2753_v41 = vpop.eup %2752  ;;  %v3998_v43 = vadd.f32 1.0, %v2751_v17 }
 0x2a7   : > { %v2755_v16 = vpop.eup %2754  ;;  %v1979_v45 = vmul.f32 %v2753_v41, %v1864_v38  ;;  %vm1984_vm4 = vweird.f32 %v2753_v41  ;;  %v1971_v56 = vsel %vm4012_vm6, %v2749_v42, %v1967_v57 }
 0x2a8   : > { %2756 = vrcp.f32 %v3998_v43  ;;  %v4004_v6 = vadd.f32 1.0, %v2755_v16  ;;  %vm1985_vm8 = vmor %vm1983_vm7, %vm1984_vm4  ;;  %v1976_v30 = vsel %vm1973_vm10, %v1975_v52, %v1971_v56  ;;  %v2002_v50 = vand.u32 2147483647, %v3998_v43 }
 0x2a9   : > { %v1980_v27 = vsub.f32 1.0, %v1979_v45  ;;  %2758 = vpow2.f32 %v2471_v49  ;;  %v2119_v32 = vmul.f32 %v1976_v30, %v3901_v53  ;;  %v2004_v37 = vand.u32 2147483648, %v3998_v43 }
 0x2aa   : > { %2760 = vpow2.f32 %v2477_v33  ;;  %v1794_v59 = vpop.f32.mrf.mxu1  ;;  %v2092_v47 = vand.u32 2147483647, %v4004_v6  ;;  %vm1998_vm11 = vweird.f32 %v3998_v43  ;;  %vm4043_vm12 = vcmp.eq.f32.partialorder %v2002_v50, 8.507059e+37 }
 0x2ab   : > { %v1981_v63 = vmul.f32 %v2753_v41, %v1980_v27  ;;  %2762 = vrcp.f32 %v4004_v6  ;;  %v4010_v61 = vadd.f32 %v3824_v4, %v1794_v59  ;;  %v2005_v42 = vor.u32 1.1754944e-38, %v2004_v37 }
 0x2ac   : > { %vm2088_vm15 = vweird.f32 %v4004_v6  ;;  %vm4055_vm0 = vcmp.eq.f32.partialorder %v2092_v47, 8.507059e+37  ;;  %v2094_v17 = vand.u32 2147483648, %v4004_v6 }
 0x2ad   : > { %v1982_v5 = vadd.f32 %v2753_v41, %v1981_v63  ;;  %v2472_v1 = vmul.f32 -1.442695, %v4010_v61 }
 0x2ae   : > { %v4016_v22 = vpop.eup %2756  ;;  %v2095_v59 = vor.u32 1.1754944e-38, %v2094_v17 }
 0x2af   : > { %v2759_v35 = vpop.eup %2758  ;;  %v1986_v55 = vsel %vm1985_vm8, %v2753_v41, %v1982_v5  ;;  %v1994_v24 = vmul.f32 %v4016_v22, %v3998_v43  ;;  %2764 = vpow2.f32 %v2472_v1  ;;  %vm1999_vm13 = vweird.f32 %v4016_v22 }
 0x2b0   : > { %v2761_v36 = vpop.eup %2760  ;;  %v1991_v20 = vsel %vm1988_vm9, %v1990_v11, %v1986_v55  ;;  %v1866_v0 = vadd.f32 1.0, %v2759_v35  ;;  %vm4062_vm1 = vmor %vm1998_vm11, %vm1999_vm13 }
 0x2b1   : > { %v4023_v7 = vpop.eup %2762  ;;  %v4025_v34 = vadd.f32 1.0, %v2761_v36  ;;  %v2120_v19 = vmul.f32 %v1991_v20, %v3921_v28  ;;  %v1995_v29 = vsub.f32 1.0, %v1994_v24 }
 0x2b2   : > { %v2084_v15 = vmul.f32 %v4023_v7, %v4004_v6  ;;  %2766 = vrcp.f32 %v1866_v0  ;;  %v1796_v26 = vpop.f32.mrf.mxu1  ;;  %vm2089_vm14 = vweird.f32 %v4023_v7  ;;  %v2017_v49 = vand.u32 2147483647, %v1866_v0 }
 0x2b3   : > { %2768 = vrcp.f32 %v4025_v34  ;;  %v4035_v58 = vadd.f32 %v3824_v4, %v1796_v26  ;;  %v1996_v28 = vmul.f32 %v4016_v22, %v1995_v29  ;;  %v2132_v51 = vpack.c.bf16 %v2120_v19, %v2119_v32  ;;  %vm4066_vm2 = vmor %vm2088_vm15, %vm2089_vm14 }
 0x2b4   : > { %v2085_v9 = vsub.f32 1.0, %v2084_v15  ;;  %v2019_v33 = vand.u32 2147483648, %v1866_v0  ;;  %v2107_v54 = vand.u32 2147483647, %v4025_v34  ;;  %v2109_v27 = vand.u32 2147483648, %v4025_v34 }
 0x2b5   : > { %v2765_v38 = vpop.eup %2764  ;;  %v2473_v4 = vmul.f32 -1.442695, %v4035_v58  ;;  %2228 = vmatmul.bf16.gmra.mxu2 %v2132_v51  ;;  %v1997_v46 = vadd.f32 %v4016_v22, %v1996_v28  ;;  %vm2013_vm5 = vweird.f32 %v1866_v0  ;;  %vm2103_vm6 = vweird.f32 %v4025_v34 }
 0x2b6   : > { %v2086_v39 = vmul.f32 %v4023_v7, %v2085_v9  ;;  %v4040_v2 = vadd.f32 1.0, %v2765_v38  ;;  %vm2018_vm8 = vcmp.eq.f32.partialorder %v2017_v49, 8.507059e+37  ;;  %v2020_v44 = vor.u32 1.1754944e-38, %v2019_v33 }
 0x2b7   : > { %v2001_v43 = vsel %vm4062_vm1, %v4016_v22, %v1997_v46  ;;  %v2110_v11 = vor.u32 1.1754944e-38, %v2109_v27  ;;  %vm2108_vm10 = vcmp.eq.f32.partialorder %v2107_v54, 8.507059e+37 }
 0x2b8   : > { %v2767_v25 = vpop.eup %2766  ;;  %2770 = vrcp.f32 %v4040_v2  ;;  %v2087_v60 = vadd.f32 %v4023_v7, %v2086_v39  ;;  %v2006_v5 = vsel %vm4043_vm12, %v2005_v42, %v2001_v43  ;;  %vm2028_vm12 = vweird.f32 %v4040_v2 }
 0x2b9   : > { %v2769_v40 = vpop.eup %2768  ;;  %v2009_v18 = vmul.f32 %v2767_v25, %v1866_v0  ;;  %2772 = vpow2.f32 %v2473_v4  ;;  %vm2014_vm3 = vweird.f32 %v2767_v25  ;;  %v2121_v20 = vmul.f32 %v2006_v5, %v3971_v31 }
 0x2ba   : > { %v2099_v21 = vmul.f32 %v2769_v40, %v4025_v34  ;;  %v2091_v6 = vsel %vm4066_vm2, %v4023_v7, %v2087_v60  ;;  %vm2104_vm4 = vweird.f32 %v2769_v40  ;;  %vm2015_vm7 = vmor %vm2013_vm5, %vm2014_vm3  ;;  %v2032_v31 = vand.u32 2147483647, %v4040_v2 }
 0x2bb   : > { %v2010_v48 = vsub.f32 1.0, %v2009_v18  ;;  %v2096_v22 = vsel %vm4055_vm0, %v2095_v59, %v2091_v6  ;;  %vm2105_vm9 = vmor %vm2103_vm6, %vm2104_vm4  ;;  %vm2254_vm3 = vcmask 261120  }
 0x2bc   : > { %v2100_v16 = vsub.f32 1.0, %v2099_v21  ;;  %v2127_v0 = vmul.f32 %v2096_v22, %v3974_v13  ;;  %vm2033_vm15 = vcmp.eq.f32.partialorder %v2032_v31, 8.507059e+37 }
 0x2bd   : > { %v2011_v45 = vmul.f32 %v2767_v25, %v2010_v48 }
 0x2be   : > { %v2101_v57 = vmul.f32 %v2769_v40, %v2100_v16  ;;  %v2771_v14 = vpop.eup %2770 }
 0x2bf   : > { %v2012_v63 = vadd.f32 %v2767_v25, %v2011_v45  ;;  %v2024_v62 = vmul.f32 %v2771_v14, %v4040_v2  ;;  %v2773_v1 = vpop.eup %2772  ;;  %vm2029_vm11 = vweird.f32 %v2771_v14 }
 0x2c0   : > { %v2102_v23 = vadd.f32 %v2769_v40, %v2101_v57  ;;  %v1868_v36 = vadd.f32 1.0, %v2773_v1  ;;  %vm2030_vm13 = vmor %vm2028_vm12, %vm2029_vm11 }
 0x2c1   : > { %v2016_v56 = vsel %vm2015_vm7, %v2767_v25, %v2012_v63  ;;  %v2025_v30 = vsub.f32 1.0, %v2024_v62 }
 0x2c2   : > { %v2021_v35 = vsel %vm2018_vm8, %v2020_v44, %v2016_v56  ;;  %v2106_v52 = vsel %vm2105_vm9, %v2769_v40, %v2102_v23  ;;  %2774 = vrcp.f32 %v1868_v36  ;;  %v2047_v37 = vand.u32 2147483647, %v1868_v36  ;;  %v2583_v40 = vld [vmem:[%s4144_s7] ss:$0 sm:$0xff] }
 0x2c3   : > { %v2122_v55 = vmul.f32 %v2021_v35, %v3993_v10  ;;  %v2111_v24 = vsel %vm2108_vm10, %v2110_v11, %v2106_v52  ;;  %v2026_v29 = vmul.f32 %v2771_v14, %v2025_v30  ;;  %v2034_v10 = vand.u32 2147483648, %v4040_v2 }
 0x2c4   : > { %v2128_v7 = vmul.f32 %v2111_v24, %v3996_v3  ;;  %v2049_v3 = vand.u32 2147483648, %v1868_v36  ;;  %vm2043_vm0 = vweird.f32 %v1868_v36  ;;  %vm2048_vm2 = vcmp.eq.f32.partialorder %v2047_v37, 8.507059e+37 }
 0x2c5   : > { %v2133_v34 = vpack.c.bf16 %v2122_v55, %v2121_v20  ;;  %v2027_v26 = vadd.f32 %v2771_v14, %v2026_v29  ;;  %v2035_v38 = vor.u32 1.1754944e-38, %v2034_v10 }
 0x2c6   : > { %v2136_v19 = vpack.c.bf16 %v2128_v7, %v2127_v0  ;;  %v2050_v51 = vor.u32 1.1754944e-38, %v2049_v3 }
 0x2c7   : > { %2233 = vmatmul.bf16.gmra.mxu2 %v2133_v34  ;;  %v2031_v50 = vsel %vm2030_vm13, %v2771_v14, %v2027_v26 }
 0x2c8   : > { %2248 = vmatmul.bf16.gmra.mxu3 %v2136_v19  ;;  %v2775_v15 = vpop.eup %2774  ;;  %v2036_v39 = vsel %vm2033_vm15, %v2035_v38, %v2031_v50 }
 0x2c9   : > { %v2039_v32 = vmul.f32 %v2775_v15, %v1868_v36  ;;  %vm2044_vm14 = vweird.f32 %v2775_v15  ;;  %v2123_v2 = vmul.f32 %v2036_v39, %v4010_v61 }
 0x2ca   : > { %vm2045_vm1 = vmor %vm2043_vm0, %vm2044_vm14 }
 0x2cb   : > { %v2040_v13 = vsub.f32 1.0, %v2039_v32 }
 0x2cd   : > { %v2041_v9 = vmul.f32 %v2775_v15, %v2040_v13 }
 0x2cf   : > { %v2042_v28 = vadd.f32 %v2775_v15, %v2041_v9 }
 0x2d1   : > { %v2046_v47 = vsel %vm2045_vm1, %v2775_v15, %v2042_v28 }
 0x2d2   : > { %v2051_v25 = vsel %vm2048_vm2, %v2050_v51, %v2046_v47 }
 0x2d3   : > { %v2124_v53 = vmul.f32 %v2051_v25, %v4035_v58 }
 0x2d5   : > { %v2134_v4 = vpack.c.bf16 %v2124_v53, %v2123_v2 }
 0x2d7   : > { %2238 = vmatmul.bf16.gmra.mxu2 %v2134_v4 }
 0x304   : > { %v2214_v42 = vpop.f32.mrf.mxu2 }
 0x305   : > { %v2215_v61 = vadd.f32 %v2583_v40, %v2214_v42 }
 0x307   : > { %2255 = vst.msk [vmem:[%s4100_s11] sm:$0xff] %vm2254_vm3, %v2215_v61 }
 0x30c   : > { %v2216_v58 = vpop.f32.mrf.mxu2 }
 0x30d   : > { %v2217_v18 = vadd.f32 %v2583_v40, %v2216_v58 }
 0x30f   : > { %2256 = vst.msk [vmem:[%s4100_s11 + $0x8] sm:$0xff] %vm2254_vm3, %v2217_v18 }
 0x314   : > { %v2219_v46 = vpop.f32.mrf.mxu2 }
 0x315   : > { %v2220_v60 = vadd.f32 %v2583_v40, %v2219_v46 }
 0x317   : > { %2257 = vst.msk [vmem:[%s4100_s11 + $0x10] sm:$0xff] %vm2254_vm3, %v2220_v60 }
 0x31c   : > { %v2221_v21 = vpop.f32.mrf.mxu2 }
 0x31d   : > { %v2222_v8 = vadd.f32 %v2583_v40, %v2221_v21 }
 0x31f   : > { %2258 = vst.msk [vmem:[%s4100_s11 + $0x18] sm:$0xff] %vm2254_vm3, %v2222_v8 }
 0x324   : > { %v2244_v17 = vpop.f32.mrf.mxu3 }
 0x325   : > { %v2245_v48 = vadd.f32 %v2583_v40, %v2244_v17 }
 0x326   : > { %v2224_v41 = vpop.f32.mrf.mxu2 }
 0x327   : > { %2267 = vst.msk [vmem:[%s4100_s11 + $0x60] sm:$0xff] %vm2254_vm3, %v2245_v48  ;;  %v2225_v49 = vadd.f32 %v2583_v40, %v2224_v41 }
 0x329   : > { %2259 = vst.msk [vmem:[%s4100_s11 + $0x20] sm:$0xff] %vm2254_vm3, %v2225_v49 }
 0x32c   : > { %v2246_v33 = vpop.f32.mrf.mxu3 }
 0x32d   : > { %v2247_v16 = vadd.f32 %v2583_v40, %v2246_v33 }
 0x32e   : > { %v2226_v12 = vpop.f32.mrf.mxu2 }
 0x32f   : > { %2268 = vst.msk [vmem:[%s4100_s11 + $0x68] sm:$0xff] %vm2254_vm3, %v2247_v16  ;;  %v2227_v45 = vadd.f32 %v2583_v40, %v2226_v12 }
 0x331   : > { %2260 = vst.msk [vmem:[%s4100_s11 + $0x28] sm:$0xff] %vm2254_vm3, %v2227_v45 }
 0x338   : > { %v2229_v54 = vpop.f32.mrf.mxu2 }
 0x339   : > { %v2230_v27 = vadd.f32 %v2583_v40, %v2229_v54 }
 0x33b   : > { %2261 = vst.msk [vmem:[%s4100_s11 + $0x30] sm:$0xff] %vm2254_vm3, %v2230_v27 }
 0x340   : > { %v2231_v43 = vpop.f32.mrf.mxu2 }
 0x341   : > { %v2232_v6 = vadd.f32 %v2583_v40, %v2231_v43 }
 0x343   : > { %2262 = vst.msk [vmem:[%s4100_s11 + $0x38] sm:$0xff] %vm2254_vm3, %v2232_v6 }
 0x34a   : > { %v2234_v57 = vpop.f32.mrf.mxu2 }
 0x34b   : > { %v2249_v14 = vpop.f32.mrf.mxu3  ;;  %v2235_v59 = vadd.f32 %v2583_v40, %v2234_v57 }
 0x34c   : > { %v2250_v63 = vadd.f32 %v2583_v40, %v2249_v14 }
 0x34d   : > { %2263 = vst.msk [vmem:[%s4100_s11 + $0x40] sm:$0xff] %vm2254_vm3, %v2235_v59 }
 0x34e   : > { %2269 = vst.msk [vmem:[%s4100_s11 + $0x70] sm:$0xff] %vm2254_vm3, %v2250_v63 }
 0x352   : > { %v2236_v44 = vpop.f32.mrf.mxu2 }
 0x353   : > { %v2251_v23 = vpop.f32.mrf.mxu3  ;;  %v2237_v62 = vadd.f32 %v2583_v40, %v2236_v44 }
 0x354   : > { %v2252_v5 = vadd.f32 %v2583_v40, %v2251_v23 }
 0x355   : > { %2264 = vst.msk [vmem:[%s4100_s11 + $0x48] sm:$0xff] %vm2254_vm3, %v2237_v62 }
 0x356   : > { %2270 = vst.msk [vmem:[%s4100_s11 + $0x78] sm:$0xff] %vm2254_vm3, %v2252_v5 }
 0x35a   : > { %v2239_v22 = vpop.f32.mrf.mxu2 }
 0x35b   : > { %v2240_v56 = vadd.f32 %v2583_v40, %v2239_v22 }
 0x35d   : > { %2265 = vst.msk [vmem:[%s4100_s11 + $0x50] sm:$0xff] %vm2254_vm3, %v2240_v56 }
 0x362   : > { %v2241_v11 = vpop.f32.mrf.mxu2 }
 0x363   : > { %v2242_v1 = vadd.f32 %v2583_v40, %v2241_v11 }
 0x365   : > { %2266 = vst.msk [vmem:[%s4100_s11 + $0x58] sm:$0xff] %vm2254_vm3, %v2242_v1 }
 0x366 PF: > { %s18_s27 = sadd.s32 1, %s2784_s27  }
 0x367   : > { %p15_p4 = scmp.ge.s32.totalorder %s18_s27, 4  }
 0x369   :  { %17 = sbr.rel (!%p15_p4) target bundleno = 1 (0x1), region = 85 }

</bundles_post_ra>
